<compile_context>
chip_gen: v7x
topology: tpu7x:2x2x1
jax: 0.10.0
libtpu: 0.0.40
codegen_flags: <defaults>
</compile_context>

<pallas_src>
import math
import functools

import jax
import jax.numpy as jnp
from jax.experimental import pallas as pl
from jax.experimental.pallas import tpu as pltpu


# ---------------- in-kernel helpers (pure jnp, traced inside the kernels) ----------------

_GELU_C = math.sqrt(2.0 / math.pi)


def _gelu_tanh(x):
    # GELU with tanh approximation (matches nn.GELU(approximate='tanh'))
    return 0.5 * x * (1.0 + jnp.tanh(_GELU_C * (x + 0.044715 * x * x * x)))


def _layernorm(x, gamma, beta, eps=1e-5):
    mu = jnp.mean(x, axis=-1, keepdims=True)
    xc = x - mu
    var = jnp.mean(xc * xc, axis=-1, keepdims=True)
    return xc * jax.lax.rsqrt(var + eps) * gamma + beta


def _pick_tile(total, preferred):
    """Largest multiple of 8 <= preferred that divides `total`; else the full extent."""
    if total <= preferred:
        return total
    t = (preferred // 8) * 8
    while t >= 8:
        if total % t == 0:
            return t
        t -= 8
    return total


def _heads_per_step(n_head, hd):
    """Smallest head-group size hp dividing n_head with hp*hd a multiple of 128."""
    for d in range(1, n_head + 1):
        if n_head % d == 0 and (d * hd) % 128 == 0:
            return d
    return n_head


def _vmem_limit(est_block_bytes):
    # ~75% of physical VMEM (v5e/v6e -> 96 MiB, v7x -> 48 MiB); conservative 48 MiB fallback.
    cap = 48 << 20
    try:
        phys = getattr(pltpu.get_tpu_info(), "vmem_capacity_bytes", None)
        if phys:
            cap = (int(phys) * 3) // 4
    except Exception:
        pass
    return int(min(max(2 * est_block_bytes + (8 << 20), 32 << 20), cap))


def _compiler_params(semantics, est_block_bytes):
    return pltpu.CompilerParams(dimension_semantics=semantics,
                                vmem_limit_bytes=_vmem_limit(est_block_bytes))


# ---------------- kernel 1: LN1 + fused QKV projection (row-tiled) ----------------

def _ln_qkv_kernel(x_ref, g_ref, b_ref, w_ref, bias_ref, o_ref):
    x = x_ref[...]                                        # (tm, C) fp32
    h = _layernorm(x, g_ref[...], b_ref[...])             # fp32 elementwise
    acc = jnp.dot(h.astype(jnp.bfloat16), w_ref[...],     # bf16 MXU, fp32 accumulate
                  preferred_element_type=jnp.float32)
    acc = acc + bias_ref[...]                             # bias once per tile, fp32 epilogue
    o_ref[...] = acc.astype(o_ref.dtype)                  # bf16 out (q already pre-scaled)


# ---------------- kernel 2: causal flash attention (online softmax, hp heads / step) ----------------

def _flash_attn_kernel(tq, tk, hp, hd, q_ref, k_ref, v_ref, o_ref, *scratch):
    m_scs = scratch[:hp]
    l_scs = scratch[hp:2 * hp]
    acc_scs = scratch[2 * hp:]

    qi = pl.program_id(2)
    kj = pl.program_id(3)

    @pl.when(kj == 0)
    def _():
        for h in range(hp):
            m_scs[h][...] = jnp.full_like(m_scs[h], -jnp.inf)
            l_scs[h][...] = jnp.zeros_like(l_scs[h])
            acc_scs[h][...] = jnp.zeros_like(acc_scs[h])

    # Compute only on kv tiles not entirely above the causal diagonal (above-diagonal tiles
    # are also never fetched: the k/v index_maps clamp the block index in the wrapper).
    @pl.when(kj * tk <= qi * tq + (tq - 1))
    def _():
        # Causal mask built once per tile and shared across the packed heads.
        row = qi * tq + jax.lax.broadcasted_iota(jnp.int32, (tq, tk), 0)
        col = kj * tk + jax.lax.broadcasted_iota(jnp.int32, (tq, tk), 1)
        causal = col <= row

        for h in range(hp):                               # static unroll over packed heads
            lo = h * hd
            qh = q_ref[:, lo:lo + hd]                     # (tq, hd) bf16 (pre-scaled q)
            kh = k_ref[:, lo:lo + hd]                     # (tk, hd) bf16
            vh = v_ref[:, lo:lo + hd]                     # (tk, hd) bf16
            s = jax.lax.dot_general(qh, kh, (((1,), (1,)), ((), ())),
                                    preferred_element_type=jnp.float32)   # (tq, tk) fp32
            s = jnp.where(causal, s, -1e30)

            m_prev = m_scs[h][...]
            m_new = jnp.maximum(m_prev, jnp.max(s, axis=-1, keepdims=True))
            alpha = jnp.exp(m_prev - m_new)
            p = jnp.exp(s - m_new)                        # fp32
            l_scs[h][...] = alpha * l_scs[h][...] + jnp.sum(p, axis=-1, keepdims=True)
            acc_scs[h][...] = alpha * acc_scs[h][...] + jnp.dot(
                p.astype(vh.dtype), vh, preferred_element_type=jnp.float32)
            m_scs[h][...] = m_new

    @pl.when(kj == pl.num_programs(3) - 1)
    def _():
        for h in range(hp):
            lo = h * hd
            inv_l = pl.reciprocal(l_scs[h][...], approx=True)   # EUP slot, ~free
            o_ref[:, lo:lo + hd] = (acc_scs[h][...] * inv_l).astype(o_ref.dtype)


# ---------------- kernel 3: attn c_proj + residual + LN2 + MLP + residual (row-tiled) ----------------

def _proj_mlp_kernel(y_ref, x_ref, wp_ref, bp_ref, g2_ref, b2_ref,
                     wfc_ref, bfc_ref, w2_ref, b2p_ref, o_ref):
    y = y_ref[...]                                        # (tm, C) bf16  (attn output, head-major)
    x = x_ref[...]                                        # (tm, C) fp32  (residual stream)
    proj = jnp.dot(y, wp_ref[...], preferred_element_type=jnp.float32) + bp_ref[...]
    x1 = x + proj                                         # first residual
    h2 = _layernorm(x1, g2_ref[...], b2_ref[...])         # fp32
    f = jnp.dot(h2.astype(jnp.bfloat16), wfc_ref[...],
                preferred_element_type=jnp.float32) + bfc_ref[...]
    f = _gelu_tanh(f)                                     # fp32 GELU (tanh)
    m = jnp.dot(f.astype(jnp.bfloat16), w2_ref[...],
                preferred_element_type=jnp.float32) + b2p_ref[...]
    o_ref[...] = (x1 + m).astype(o_ref.dtype)             # second residual


# ---------------- parameter preparation (done ONCE, not per forward call) ----------------

def prepare_params(params, n_head):
    """Fold 1/sqrt(hd) into the q columns of c_attn and cast MXU weights to bf16."""
    (ln1_g, ln1_b, wqkv, bqkv, wproj, bproj,
     ln2_g, ln2_b, wfc, bfc, wp2, bp2) = params
    C = wqkv.shape[0]
    hd = C // n_head
    scale = 1.0 / math.sqrt(hd)
    wqkv = wqkv.at[:, :C].multiply(scale)
    bqkv = bqkv.at[:, :C].multiply(scale)
    bf = jnp.bfloat16
    return (ln1_g, ln1_b, wqkv.astype(bf), bqkv, wproj.astype(bf), bproj,
            ln2_g, ln2_b, wfc.astype(bf), bfc, wp2.astype(bf), bp2)


# ---------------- wrapper ----------------

def block_forward(x, prepared_params, n_head, *, tm=512, tq=256, tk=256):
    """Forward pass of the transformer Block. `prepared_params` must come from prepare_params()."""
    (ln1_g, ln1_b, wqkv_b, bqkv, wproj_b, bproj,
     ln2_g, ln2_b, wfc_b, bfc, wp2_b, bp2) = prepared_params

    B, T, C = x.shape
    H = n_head
    hd = C // H
    N = B * T

    hp = _heads_per_step(H, hd)           # heads packed per attention grid step
    hw = hp * hd                          # lane width of one attention block
    assert hw % 128 == 0, "unsupported n_embd/n_head layout (need hp*hd % 128 == 0)"
    HPG = H // hp                         # number of head groups

    tm = _pick_tile(N, tm)
    tq = _pick_tile(T, tq)
    tk = _pick_tile(T, tk)
    assert N % tm == 0 and T % tq == 0 and T % tk == 0, "shapes must divide tile sizes"

    bf = jnp.bfloat16
    x2d = x.reshape(N, C)

    def full(shape):
        return pl.BlockSpec(shape, lambda i, _shape=shape: tuple(0 for _ in _shape))

    # ---- stage 1: LN1 + fused QKV projection -> (N, 3C) bf16 ----
    est1 = tm * C * 4 + 2 * C * 4 + C * 3 * C * 2 + 3 * C * 4 + tm * 3 * C * 2
    qkv = pl.pallas_call(
        _ln_qkv_kernel,
        out_shape=jax.ShapeDtypeStruct((N, 3 * C), bf),
        grid=(N // tm,),
        in_specs=[
            pl.BlockSpec((tm, C), lambda i: (i, 0)),      # x rows
            full((1, C)), full((1, C)),                   # ln_1 gamma, beta
            full((C, 3 * C)), full((1, 3 * C)),           # c_attn W (bf16, q pre-scaled), b
        ],
        out_specs=pl.BlockSpec((tm, 3 * C), lambda i: (i, 0)),
        compiler_params=_compiler_params(("parallel",), est1),
    )(x2d, ln1_g, ln1_b, wqkv_b, bqkv)

    # ---- stage 2: causal flash attention, heads indexed directly inside qkv (no transposes) ----
    qpt = T // tq   # q tiles per sequence
    kpt = T // tk   # kv tiles per sequence

    def q_map(b, p, i, j):
        return (b * qpt + i, p)

    def kv_row(b, i, j):
        # Clamp the kv block index so above-diagonal tiles are never DMA'd
        # (the in-kernel pl.when guard skips their compute).
        return b * kpt + jnp.minimum(j, (i * tq + tq - 1) // tk)

    def k_map(b, p, i, j):
        return (kv_row(b, i, j), HPG + p)

    def v_map(b, p, i, j):
        return (kv_row(b, i, j), 2 * HPG + p)

    def o_map(b, p, i, j):
        return (b * qpt + i, p)

    est2 = (2 * tq + 2 * tk) * hw * 2 + hp * tq * (hd + 2) * 4
    y2d = pl.pallas_call(
        functools.partial(_flash_attn_kernel, tq, tk, hp, hd),
        out_shape=jax.ShapeDtypeStruct((N, C), bf),
        grid=(B, HPG, qpt, kpt),
        in_specs=[
            pl.BlockSpec((tq, hw), q_map),                # q columns of qkv
            pl.BlockSpec((tk, hw), k_map),                # k columns of qkv
            pl.BlockSpec((tk, hw), v_map),                # v columns of qkv
        ],
        out_specs=pl.BlockSpec((tq, hw), o_map),          # written head-major into (N, C)
        scratch_shapes=([pltpu.VMEM((tq, 1), jnp.float32) for _ in range(hp)]      # running max
                        + [pltpu.VMEM((tq, 1), jnp.float32) for _ in range(hp)]    # running denom
                        + [pltpu.VMEM((tq, hd), jnp.float32) for _ in range(hp)]), # running acc
        compiler_params=_compiler_params(
            ("parallel", "parallel", "parallel", "arbitrary"), est2),
    )(qkv, qkv, qkv)

    # ---- stage 3: attn c_proj + residual + LN2 + MLP + residual ----
    est3 = (tm * C * 2 + tm * C * 4 + C * C * 2 + C * 4 + 2 * C * 4
            + C * 4 * C * 2 + 4 * C * 4 + 4 * C * C * 2 + C * 4
            + tm * C * 4 + tm * 4 * C * 4)
    out2d = pl.pallas_call(
        _proj_mlp_kernel,
        out_shape=jax.ShapeDtypeStruct((N, C), x.dtype),
        grid=(N // tm,),
        in_specs=[
            pl.BlockSpec((tm, C), lambda i: (i, 0)),      # attention output (bf16)
            pl.BlockSpec((tm, C), lambda i: (i, 0)),      # residual stream (fp32)
            full((C, C)), full((1, C)),                   # attn c_proj W (bf16), b
            full((1, C)), full((1, C)),                   # ln_2 gamma, beta
            full((C, 4 * C)), full((1, 4 * C)),           # mlp c_fc W (bf16), b
            full((4 * C, C)), full((1, C)),               # mlp c_proj W (bf16), b
        ],
        out_specs=pl.BlockSpec((tm, C), lambda i: (i, 0)),
        compiler_params=_compiler_params(("parallel",), est3),
    )(y2d, x2d, wproj_b, bproj, ln2_g, ln2_b, wfc_b, bfc, wp2_b, bp2)

    return out2d.reshape(B, T, C)


# ---------------- pure-JAX fp32 reference (for correctness check) ----------------

def block_reference(x, params, n_head):
    (ln1_g, ln1_b, wqkv, bqkv, wproj, bproj,
     ln2_g, ln2_b, wfc, bfc, wp2, bp2) = params
    B, T, C = x.shape
    hd = C // n_head

    h = _layernorm(x, ln1_g, ln1_b)
    qkv = h @ wqkv + bqkv
    q, k, v = jnp.split(qkv, 3, axis=-1)
    q = q.reshape(B, T, n_head, hd).transpose(0, 2, 1, 3)
    k = k.reshape(B, T, n_head, hd).transpose(0, 2, 1, 3)
    v = v.reshape(B, T, n_head, hd).transpose(0, 2, 1, 3)
    s = jnp.einsum('bhtd,bhsd->bhts', q, k) / math.sqrt(hd)
    causal = jnp.tril(jnp.ones((T, T), bool))
    s = jnp.where(causal, s, -1e30)
    p = jax.nn.softmax(s, axis=-1)
    y = jnp.einsum('bhts,bhsd->bhtd', p, v)
    y = y.transpose(0, 2, 1, 3).reshape(B, T, C)
    x = x + (y @ wproj + bproj)

    h2 = _layernorm(x, ln2_g, ln2_b)
    f = _gelu_tanh(h2 @ wfc + bfc)
    return x + (f @ wp2 + bp2)


# ---------------- parameter init (deterministic, PyTorch-Linear-style uniform) ----------------

def init_params(key, n_embd):
    C = n_embd
    ks = jax.random.split(key, 8)

    def lin(kw, kb, fan_in, fan_out):
        bound = 1.0 / math.sqrt(fan_in)
        w = jax.random.uniform(kw, (fan_in, fan_out), jnp.float32, -bound, bound)
        b = jax.random.uniform(kb, (1, fan_out), jnp.float32, -bound, bound)
        return w, b

    wqkv, bqkv = lin(ks[0], ks[1], C, 3 * C)
    wproj, bproj = lin(ks[2], ks[3], C, C)
    wfc, bfc = lin(ks[4], ks[5], C, 4 * C)
    wp2, bp2 = lin(ks[6], ks[7], 4 * C, C)

    ln1_g = jnp.ones((1, C), jnp.float32)
    ln1_b = jnp.zeros((1, C), jnp.float32)
    ln2_g = jnp.ones((1, C), jnp.float32)
    ln2_b = jnp.zeros((1, C), jnp.float32)

    return (ln1_g, ln1_b, wqkv, bqkv, wproj, bproj,
            ln2_g, ln2_b, wfc, bfc, wp2, bp2)


if __name__ == "__main__":
    # Small but TPU-tile-friendly config: hd = 64 (GPT-2-like), so two heads are packed
    # per attention grid step to keep blocks 128-lane dense.
    B, T, C, n_head = 2, 128, 256, 4

    key = jax.random.PRNGKey(0)
    kx, kp = jax.random.split(key)
    x = jax.random.normal(kx, (B, T, C), jnp.float32)
    params = init_params(kp, C)
    prepped = prepare_params(params, n_head)   # scale folding + bf16 casts, done once

    # tq=tk=64 -> 2 kv tiles per q tile: exercises online softmax, causal compute-skip,
    # and the clamped (no-DMA) above-diagonal kv tiles.
    out = block_forward(x, prepped, n_head, tm=128, tq=64, tk=64)
    out = jax.block_until_ready(out)

    ref = block_reference(x, params, n_head)
    assert out.shape == (B, T, C)
    # bf16 MXU inputs (fp32 accumulation) => loosened tolerance vs. the fp32 reference.
    assert jnp.allclose(out, ref, rtol=5e-2, atol=5e-2), "mismatch vs pure-JAX reference"

    print("KERNEL_OK")
</pallas_src>

<mosaic_0001>
module attributes {stable_mosaic.version = 11 : i64} {
  func.func @_ln_qkv_kernel(%arg0: i32, %arg1: memref<128x256xf32, #tpu.memory_space<vmem>>, %arg2: memref<1x256xf32, #tpu.memory_space<vmem>>, %arg3: memref<1x256xf32, #tpu.memory_space<vmem>>, %arg4: memref<256x768xbf16, #tpu.memory_space<vmem>>, %arg5: memref<1x768xf32, #tpu.memory_space<vmem>>, %arg6: memref<128x768xbf16, #tpu.memory_space<vmem>>) attributes {dimension_semantics = [#tpu.dimension_semantics<parallel>], iteration_bounds = array<i64: 2>, scalar_prefetch = 0 : i64, scratch_operands = 0 : i64, tpu.core_type = #tpu.core_type<tc>, window_params = [{transform_indices = @transform_0, window_bounds = array<i64: 128, 256>}, {pipeline_mode = #tpu.pipeline_mode<synchronous>, transform_indices = @transform_1, window_bounds = array<i64: 1, 256>}, {pipeline_mode = #tpu.pipeline_mode<synchronous>, transform_indices = @transform_2, window_bounds = array<i64: 1, 256>}, {pipeline_mode = #tpu.pipeline_mode<synchronous>, transform_indices = @transform_3, window_bounds = array<i64: 256, 768>}, {pipeline_mode = #tpu.pipeline_mode<synchronous>, transform_indices = @transform_4, window_bounds = array<i64: 1, 768>}, {transform_indices = @transform_5, window_bounds = array<i64: 128, 768>}]} {
    %c0 = arith.constant 0 : index
    %c0_0 = arith.constant 0 : index
    %0 = vector.load %arg1[%c0, %c0_0] : memref<128x256xf32, #tpu.memory_space<vmem>>, vector<128x256xf32>
    %c0_1 = arith.constant 0 : index
    %c0_2 = arith.constant 0 : index
    %1 = vector.load %arg2[%c0_1, %c0_2] : memref<1x256xf32, #tpu.memory_space<vmem>>, vector<1x256xf32>
    %c0_3 = arith.constant 0 : index
    %c0_4 = arith.constant 0 : index
    %2 = vector.load %arg3[%c0_3, %c0_4] : memref<1x256xf32, #tpu.memory_space<vmem>>, vector<1x256xf32>
    %cst = arith.constant dense<0.000000e+00> : vector<128xf32>
    %3 = vector.multi_reduction <add>, %0, %cst [1] : vector<128x256xf32> to vector<128xf32>
    %4 = vector.shape_cast %3 : vector<128xf32> to vector<128x1xf32>
    %cst_5 = arith.constant 2.560000e+02 : f32
    %5 = vector.broadcast %cst_5 : f32 to vector<128x1xf32>
    %6 = arith.divf %4, %5 : vector<128x1xf32>
    %7 = vector.broadcast %6 : vector<128x1xf32> to vector<128x256xf32>
    %8 = arith.subf %0, %7 : vector<128x256xf32>
    %9 = arith.mulf %8, %8 : vector<128x256xf32>
    %cst_6 = arith.constant dense<0.000000e+00> : vector<128xf32>
    %10 = vector.multi_reduction <add>, %9, %cst_6 [1] : vector<128x256xf32> to vector<128xf32>
    %11 = vector.shape_cast %10 : vector<128xf32> to vector<128x1xf32>
    %cst_7 = arith.constant 2.560000e+02 : f32
    %12 = vector.broadcast %cst_7 : f32 to vector<128x1xf32>
    %13 = arith.divf %11, %12 : vector<128x1xf32>
    %cst_8 = arith.constant 9.99999974E-6 : f32
    %14 = vector.broadcast %cst_8 : f32 to vector<128x1xf32>
    %15 = arith.addf %13, %14 : vector<128x1xf32>
    %16 = math.rsqrt %15 : vector<128x1xf32>
    %17 = vector.broadcast %16 : vector<128x1xf32> to vector<128x256xf32>
    %18 = arith.mulf %8, %17 : vector<128x256xf32>
    %19 = vector.broadcast %1 : vector<1x256xf32> to vector<128x256xf32>
    %20 = arith.mulf %18, %19 : vector<128x256xf32>
    %21 = vector.broadcast %2 : vector<1x256xf32> to vector<128x256xf32>
    %22 = arith.addf %20, %21 : vector<128x256xf32>
    %23 = arith.truncf %22 : vector<128x256xf32> to vector<128x256xbf16>
    %c0_9 = arith.constant 0 : index
    %c0_10 = arith.constant 0 : index
    %24 = vector.load %arg4[%c0_9, %c0_10] : memref<256x768xbf16, #tpu.memory_space<vmem>>, vector<256x768xbf16>
    %cst_11 = arith.constant dense<0.000000e+00> : vector<128x768xf32>
    %25 = tpu.matmul %23, %24, %cst_11 {dimension_numbers = #tpu.dot_dimension_numbers<[1], [0], [0], [1], [0, 0, 1, 1], [], []>} : vector<128x256xbf16>, vector<256x768xbf16>, vector<128x768xf32> -> vector<128x768xf32>
    %c0_12 = arith.constant 0 : index
    %c0_13 = arith.constant 0 : index
    %26 = vector.load %arg5[%c0_12, %c0_13] : memref<1x768xf32, #tpu.memory_space<vmem>>, vector<1x768xf32>
    %27 = vector.broadcast %26 : vector<1x768xf32> to vector<128x768xf32>
    %28 = arith.addf %25, %27 : vector<128x768xf32>
    %29 = arith.truncf %28 : vector<128x768xf32> to vector<128x768xbf16>
    %c0_14 = arith.constant 0 : index
    %c0_15 = arith.constant 0 : index
    %30 = vector.load %arg6[%c0_14, %c0_15] : memref<128x768xbf16, #tpu.memory_space<vmem>>, vector<128x768xbf16>
    tpu.vector_store %arg6[%c0_14, %c0_15], %29 {strides = array<i32>} : memref<128x768xbf16, #tpu.memory_space<vmem>>, vector<128x768xbf16>,
    return
  }
  func.func @transform_0(%arg0: i32) -> (i32, i32) {
    %c0_i32 = arith.constant 0 : i32
    %c0_i32_0 = arith.constant 0 : i32
    return %arg0, %c0_i32 : i32, i32
  }
  func.func @transform_1(%arg0: i32) -> (i32, i32) {
    %c0_i32 = arith.constant 0 : i32
    %c0_i32_0 = arith.constant 0 : i32
    %c0_i32_1 = arith.constant 0 : i32
    return %c0_i32, %c0_i32_0 : i32, i32
  }
  func.func @transform_2(%arg0: i32) -> (i32, i32) {
    %c0_i32 = arith.constant 0 : i32
    %c0_i32_0 = arith.constant 0 : i32
    %c0_i32_1 = arith.constant 0 : i32
    return %c0_i32, %c0_i32_0 : i32, i32
  }
  func.func @transform_3(%arg0: i32) -> (i32, i32) {
    %c0_i32 = arith.constant 0 : i32
    %c0_i32_0 = arith.constant 0 : i32
    %c0_i32_1 = arith.constant 0 : i32
    return %c0_i32, %c0_i32_0 : i32, i32
  }
  func.func @transform_4(%arg0: i32) -> (i32, i32) {
    %c0_i32 = arith.constant 0 : i32
    %c0_i32_0 = arith.constant 0 : i32
    %c0_i32_1 = arith.constant 0 : i32
    return %c0_i32, %c0_i32_0 : i32, i32
  }
  func.func @transform_5(%arg0: i32) -> (i32, i32) {
    %c0_i32 = arith.constant 0 : i32
    %c0_i32_0 = arith.constant 0 : i32
    return %arg0, %c0_i32 : i32, i32
  }
}

</mosaic_0001>

<bundles_post_ra>
// kernel: tpu_custom_call.1
= control target key start
LH: loop header
LB: loop body
LE: loop exit
PB: predicated region body
PF: predicated region fallthrough
CT: control target
= control target key end

     0   :  { %10 = vsyncpa [#allocation3], 0  ;;  %s3542_s0 = inlined_call_operand.hbm [shape: f32[256,256], index: 0, kind: input, shape index: {}]   ;;  %s3543_s1 = inlined_call_operand.vmem [shape: f32[1,256], index: 1, kind: input, shape index: {}]   ;;  %s3544_s2 = inlined_call_operand.vmem [shape: f32[1,256], index: 2, kind: input, shape index: {}]   ;;  %s3545_s3 = inlined_call_operand.hbm [shape: bf16[256,768], index: 3, kind: input, shape index: {}]   ;;  %s3546_s4 = inlined_call_operand.vmem [shape: f32[1,768], index: 4, kind: input, shape index: {}]   ;;  %s3547_s5 = inlined_call_operand.hbm [shape: bf16[256,768], index: 5, kind: output, shape index: {}]  }
   0x1   :  { %12 = vsyncpa [#allocation3 + $0x1], 0 }
   0x2   :  { %13 = vsyncpa [#allocation6], 0 }
   0x3   :  { %14 = vsyncpa [#allocation4], 0 }
   0x4   :  { %16 = vsyncpa [#allocation4 + $0x1], 0  ;;  %s2687_s18 = smov 0   ;;  %s2689_s19 = smov 0  }
   0x5   :  { %s2691_s20 = smov 0   ;;  %s2693_s21 = smov 0  }
   0x6 LB: > { %s2708_s22 = sadd.s32 4294967295, %s2646_s21   ;;  %s2035_s23 = sadd.s32 4294967294, %s2646_s21   ;;  %s2646_s21 = sphi %s2693_s21, %s3567_s21   ;;  %s2642_s20 = sphi %s2691_s20, %s3566_s20   ;;  %s2638_s19 = sphi %s2689_s19, %s3565_s19   ;;  %s2634_s18 = sphi %s2687_s18, %s3564_s18  }
   0x7   : > { %p42_p0 = scmp.ne.s32.totalorder %s2638_s19, %s2634_s18  ;;  %p3548_p1 = scmp.eq.s32.totalorder %s2708_s22, 0 }
   0x8   : > { %p156_p3 = scmp.eq.s32.totalorder %s2035_s23, 1  ;;  %p2036_p5 = scmp.ge.s32.totalorder %s2646_s21, 1 }
   0x9   : > { %p2717_p4 = por %p3548_p1, %p42_p0  ;;  %p163_p7 = scmp.lt.s32.totalorder %s2646_s21, 3 }
   0xa   : > { %p2722_p6 = por %p156_p3, %p42_p0  ;;  %s2648_s27 = smov [#allocation5]  }
   0xb   : > { %s3551_s24 = scalar_select %p2717_p4, 1, 0 }
   0xc   : > { %s3552_s25 = scalar_select %p2722_p6, 1, 0 }
   0xd   : > { %p2727_p8 = pnand %p2036_p5, %p163_p7  ;;  %s181_s28 = sshll.u32 %s2648_s27, 4  ;;  %s2731_s28 = int_to_ptr.vmem [resolvable:$true] %s181_s28 }
   0xe   : > { %s2743_s30 = sadd.s32 1, %s2646_s21   ;;  %s29_s6 = sadd.s32 1, %s2642_s20 }
   0xf   : > { %s3553_s26 = scalar_select %p2727_p8, 1, 0 }
  0x10   : > { %p2287_p9 = pneg %p2727_p8  ;;  %s26_s7 = ssub.s32 %s2646_s21, %s2743_s30 }
  0x11   : > { %s2518_s10 = scalar_lea.hbm %s3545_s3, 12288 }
  0x12   : > { %p2738_p11 = pnand %p2287_p9, %p3548_p1  ;;  %p2519_p12 = scmp.ne.s32.totalorder %s3545_s3, %s2518_s10 }
  0x13   : > { %p2525_p5 = scmp.lt.u32.totalorder %s2518_s10, %s3545_s3 }
  0x14   : > { %p2520_p13 = pneg %p2738_p11 }
  0x16   : > { %p2521_p0 = pnand %p2520_p13, %p2519_p12 }
  0x18   : > { %p2522_p3 = pneg %p2521_p0 }
  0x1a   : > { %p2527_p7 = pnand %p2525_p5, %p2522_p3 }
  0x1c   : > { %2530 = shalt.err (!%p2527_p7)
}
  0x1d   : > { %s2531_s15 = scalar_lea.vmem %s2731_s28, 12288  ;;  %p2539_p2 = scmp.lt.s32.totalorder %s2731_s28, %s2731_s28 }
  0x1e   : > { %p2532_p9 = scmp.ne.s32.totalorder %s2731_s28, %s2531_s15  ;;  %p2540_p6 = scmp.lt.s32.totalorder %s2531_s15, %s2531_s15 }
  0x20   : > { %p2534_p10 = pnand %p2532_p9, %p2520_p13  ;;  %p2541_p4 = por %p2540_p6, %p2539_p2 }
  0x22   : > { %p2535_p1 = pneg %p2534_p10 }
  0x24   : > { %p2542_p8 = pnand %p2541_p4, %p2535_p1 }
  0x26   : > { %2545 = shalt.err (!%p2542_p8)
}
  0x27   : > { %s2649_s16 = smov 384   ;;  %s2650_s17 = smov 24  }
  0x28   : > { %2290 = dma.hbm_to_vmem [thread:$0]  (!%p2738_p11), %s3545_s3, 12288, %s2731_s28, [#allocation6], %s2649_s16, %s2649_s16, %s2650_s17  }
  0x29   : > { %p27_p2 = scmp.eq.s32.totalorder %s26_s7, 0  ;;  %p36_p1 = scmp.ne.s32.totalorder %s2642_s20, %s2638_s19 }
  0x2a   : > { %p37_p4 = scmp.eq.s32.totalorder %s2646_s21, 0  ;;  %p2300_p6 = scmp.lt.s32.totalorder %s2646_s21, 2 }
  0x2b   : > { %s2774_s8 = scalar_select %p27_p2, %s2642_s20, %s29_s6  }
  0x2c   : > { %p38_p8 = por %p37_p4, %p36_p1  ;;  %p3555_p10 = scmp.eq.s32.totalorder %s2708_s22, 1 }
  0x2d   : > { %s198_s10 = sand.u32 1, %s2642_s20   ;;  %s2196_s11 = sshll.u32 %s2646_s21, 12 }
  0x2e   : > { %p2778_p12 = por %p3555_p10, %p36_p1  ;;  %s2039_s12 = sshll.u32 %s198_s10, 8 }
  0x2f   : > { %s2787_s14 = scalar_lea.hbm %s3542_s0, %s2196_s11  ;;  %s202_s28 = scalar_lea.vmem [#allocation2], %s2039_s12 }
  0x30   : > { %s210_s6 = sshll.u32 %s202_s28, 4  ;;  %p2789_p11 = pnand %p2300_p6, %p38_p8  ;;  %s2793_s6 = int_to_ptr.vmem [resolvable:$true] %s210_s6 }
  0x31   : > { %s2795_s15 = scalar_lea.sflag [#allocation3], %s198_s10  ;;  %s2546_s16 = scalar_lea.hbm %s2787_s14, 4096 }
  0x32   : > { %p2547_p13 = scmp.ne.s32.totalorder %s2787_s14, %s2546_s16  ;;  %p2548_p0 = pneg %p2789_p11 }
  0x33   : > { %s2551_s27 = scalar_lea.hbm %s3542_s0, 8192  ;;  %p2552_p7 = scmp.lt.u32.totalorder %s2787_s14, %s3542_s0 }
  0x34   : > { %p2549_p3 = pnand %p2548_p0, %p2547_p13  ;;  %p2553_p9 = scmp.lt.u32.totalorder %s2551_s27, %s2546_s16 }
  0x35   : > { %p2555_p1 = scmp.lt.u32.totalorder %s2546_s16, %s2787_s14 }
  0x36   : > { %p2550_p5 = pneg %p2549_p3  ;;  %p2554_p2 = por %p2553_p9, %p2552_p7 }
  0x38   : > { %p2556_p4 = por %p2555_p1, %p2554_p2 }
  0x3a   : > { %p2557_p6 = pnand %p2556_p4, %p2550_p5 }
  0x3c   : > { %2560 = shalt.err (!%p2557_p6)
}
  0x3d   : > { %s2561_s10 = scalar_lea.vmem %s2793_s6, 4096  ;;  %s2651_s29 = smov [#allocation2]  }
  0x3e   : > { %p2562_p8 = scmp.ne.s32.totalorder %s2793_s6, %s2561_s10  ;;  %s2566_s13 = sshll.u32 %s2651_s29, 4  ;;  %s2567_s13 = int_to_ptr.vmem [resolvable:$false] %s2566_s13 }
  0x3f   : > { %s2568_s28 = scalar_lea.vmem %s2567_s13, 8192  ;;  %p2569_p3 = scmp.lt.s32.totalorder %s2793_s6, %s2567_s13 }
  0x40   : > { %p2564_p10 = pnand %p2562_p8, %p2548_p0  ;;  %p2570_p7 = scmp.lt.s32.totalorder %s2568_s28, %s2561_s10 }
  0x42   : > { %p2565_p13 = pneg %p2564_p10  ;;  %p2571_p9 = por %p2570_p7, %p2569_p3 }
  0x44   : > { %p2572_p2 = pnand %p2571_p9, %p2565_p13 }
  0x46   : > { %2575 = shalt.err (!%p2572_p2)
}
  0x47   : > { %s2652_s16 = smov 256   ;;  %s2653_s17 = smov 16  }
  0x48   : > { %2294 = dma.hbm_to_vmem [thread:$0]  (!%p2789_p11), %s2787_s14, 4096, %s2793_s6, %s2795_s15, %s2652_s16, %s2652_s16, %s2653_s17  }
  0x49   : > { %p3558_p0 = scmp.ne.s32.totalorder %s3553_s26, 0 }
  0x4a   : > { %s2826_s23 = sand.u32 (!%p3558_p0), 1, %s2638_s19   ;;  %p3559_p5 = scmp.ne.s32.totalorder (!%p3558_p0), %s3551_s24, 0 }
  0x4b   : > { %222 = sbr.rel (%p3558_p0) target bundleno = 731 (0x2db), region = 40  ;;  %s2044_s27 = sshll.u32 (!%p3558_p0), %s2826_s23, 8 }
  0x4c   : > { %s225_s11 = scalar_lea.sflag (!%p3558_p0), [#allocation3], %s2826_s23  ;;  %s2830_s12 = scalar_lea.vmem (!%p3558_p0), [#allocation2], %s2044_s27 }
  0x52   : > { %2621 = dma.done.wait (%p3559_p5), %s225_s11, 4096  }
  0x53   : > { %2623 = vsyncadd (%p3559_p5), %s225_s11, 4294963200  ;;  %p3560_p11 = scmp.eq.s32.totalorder %s2708_s22, 0 }
  0x55   : > { %2625 = dma.done.wait (%p3560_p11), [#allocation6], 12288   ;;  %p3561_p1 = pmov %p3560_p11 }
  0x56   : > { %v2841_v0 = vld [vmem:[%s2830_s12] sm:$0xff]  ;;  %v2844_v1 = vld [vmem:[%s2830_s12 + $0x8] sm:$0xff]  ;;  %v2855_v5 = vld [vmem:[%s2830_s12 + $0x10] sm:$0xff]  ;;  %s2277_s10 = smul.u32 384, %s2826_s23  ;;  %s1938_s27 = scalar_lea.sflag [#allocation4], %s2826_s23 }
  0x57   : > { %2627 = vsyncadd (%p3561_p1), [#allocation6], 4294955008  ;;  %v2847_v2 = vld [vmem:[%s2830_s12 + $0x20] sm:$0xff]  ;;  %v295_v3 = vadd.f32 %v2844_v1, %v2841_v0  ;;  %v2852_v4 = vld [vmem:[%s2830_s12 + $0x28] sm:$0xff]  ;;  %s2278_s13 = smul.u32 6144, %s2708_s22 }
  0x58   : > { %v2858_v6 = vld [vmem:[%s2830_s12 + $0x18] sm:$0xff]  ;;  %v301_v7 = vadd.f32 %v2852_v4, %v2847_v2  ;;  %v2863_v8 = vld [vmem:[%s2830_s12 + $0x30] sm:$0xff]  ;;  %v2873_v12 = vld [vmem:[%s2830_s12 + $0x40] sm:$0xff]  ;;  %s3345_s29 = scalar_lea.vmem [#allocation7], %s2277_s10 }
  0x59   : > { %v2866_v9 = vld [vmem:[%s2830_s12 + $0x38] sm:$0xff]  ;;  %296 = vadd.xlane.f32.xlu0 %v295_v3  ;;  %v298_v10 = vadd.f32 %v2858_v6, %v2855_v5  ;;  %v2876_v13 = vld [vmem:[%s2830_s12 + $0x48] sm:$0xff]  ;;  %v2879_v14 = vld [vmem:[%s2830_s12 + $0x50] sm:$0xff]  ;;  %s1952_s28 = sshll.u32 %s3345_s29, 4  ;;  %s3492_s17 = scalar_lea.hbm %s3547_s5, %s2278_s13  ;;  %s3496_s28 = int_to_ptr.vmem [resolvable:$true] %s1952_s28 }
  0x5a   : > { %302 = vadd.xlane.f32.xlu1 %v301_v7  ;;  %v304_v11 = vadd.f32 %v2866_v9, %v2863_v8  ;;  %v2882_v15 = vld [vmem:[%s2830_s12 + $0x58] sm:$0xff]  ;;  %v307_v16 = vadd.f32 %v2876_v13, %v2873_v12  ;;  %v2889_v18 = vld [vmem:[%s2830_s12 + $0x60] sm:$0xff]  ;;  %v2892_v19 = vld [vmem:[%s2830_s12 + $0x68] sm:$0xff]  ;;  %s2576_s11 = scalar_lea.vmem %s3496_s28, 6144 }
  0x5b   : > { %v310_v17 = vadd.f32 %v2882_v15, %v2879_v14  ;;  %v2895_v20 = vld [vmem:[%s2830_s12 + $0x70] sm:$0xff]  ;;  %v2898_v21 = vld [vmem:[%s2830_s12 + $0x78] sm:$0xff]  ;;  %v2901_v22 = vld [vmem:[%s2830_s12 + $0x80] sm:$0xff]  ;;  %v313_v24 = vadd.f32 %v2892_v19, %v2889_v18  ;;  %p2577_p4 = scmp.ne.s32.totalorder %s3496_s28, %s2576_s11 }
  0x5c   : > { %v2904_v23 = vld [vmem:[%s2830_s12 + $0x88] sm:$0xff]  ;;  %v2909_v25 = vld [vmem:[%s2830_s12 + $0x90] sm:$0xff]  ;;  %v2912_v26 = vld [vmem:[%s2830_s12 + $0x98] sm:$0xff]  ;;  %v316_v27 = vadd.f32 %v2898_v21, %v2895_v20 }
  0x5d   : > { %299 = vadd.xlane.f32.xlu0 %v298_v10  ;;  %v2917_v28 = vld [vmem:[%s2830_s12 + $0xa0] sm:$0xff]  ;;  %v2920_v29 = vld [vmem:[%s2830_s12 + $0xa8] sm:$0xff]  ;;  %v319_v30 = vadd.f32 %v2904_v23, %v2901_v22  ;;  %v2925_v31 = vld [vmem:[%s2830_s12 + $0xb0] sm:$0xff]  ;;  %v322_v33 = vadd.f32 %v2912_v26, %v2909_v25  ;;  %p2578_p6 = pnand %p2577_p4, %p2778_p12 }
  0x5e   : > { %305 = vadd.xlane.f32.xlu1 %v304_v11  ;;  %v2928_v32 = vld [vmem:[%s2830_s12 + $0xb8] sm:$0xff]  ;;  %v2933_v34 = vld [vmem:[%s2830_s12 + $0xc0] sm:$0xff]  ;;  %v2936_v35 = vld [vmem:[%s2830_s12 + $0xc8] sm:$0xff]  ;;  %v325_v36 = vadd.f32 %v2920_v29, %v2917_v28 }
  0x5f   : > { %v2941_v37 = vld [vmem:[%s2830_s12 + $0xd0] sm:$0xff]  ;;  %v2944_v38 = vld [vmem:[%s2830_s12 + $0xd8] sm:$0xff]  ;;  %v328_v39 = vadd.f32 %v2928_v32, %v2925_v31  ;;  %v2949_v40 = vld [vmem:[%s2830_s12 + $0xe0] sm:$0xff]  ;;  %v331_v42 = vadd.f32 %v2936_v35, %v2933_v34  ;;  %p2579_p8 = pneg %p2578_p6 }
  0x60   : > { %v2952_v41 = vld [vmem:[%s2830_s12 + $0xe8] sm:$0xff]  ;;  %v2957_v43 = vld [vmem:[%s2830_s12 + $0xf0] sm:$0xff]  ;;  %v2960_v44 = vld [vmem:[%s2830_s12 + $0xf8] sm:$0xff]  ;;  %v334_v45 = vadd.f32 %v2944_v38, %v2941_v37  ;;  %s2654_s12 = smov [#allocation7]  }
  0x61   : > { %308 = vadd.xlane.f32.xlu0 %v307_v16  ;;  %v337_v46 = vadd.f32 %v2952_v41, %v2949_v40  ;;  %v340_v47 = vadd.f32 %v2960_v44, %v2957_v43  ;;  %v2342_v48 = vld [vmem:[#allocation5 + $0x4] ss:$24 sps:$4 sm:$0xff]   ;;  %v2346_v50 = vld [vmem:[#allocation5] ss:$24 sps:$4 sm:$0xff]   ;;  %v2348_v52 = vld [vmem:[#allocation5 + $0x34] ss:$24 sps:$4 sm:$0xff]  }
  0x62   : > { %311 = vadd.xlane.f32.xlu1 %v310_v17  ;;  %v2344_v49 = vld [vmem:[#allocation5 + $0xc] ss:$24 sps:$4 sm:$0xff]   ;;  %v2347_v51 = vld [vmem:[#allocation5 + $0x8] ss:$24 sps:$4 sm:$0xff]   ;;  %v2350_v53 = vld [vmem:[#allocation5 + $0x3c] ss:$24 sps:$4 sm:$0xff]   ;;  %1262 = vmatprep.subr.bf16.mxu0 %v2342_v48 }
  0x63   : > { %1375 = vmatprep.subr.bf16.mxu1 %v2344_v49  ;;  %1263 = vmatpush1.bf16.msra.mxu0 %v2346_v50  ;;  %v2352_v54 = vld [vmem:[#allocation5 + $0x30] ss:$24 sps:$4 sm:$0xff]   ;;  %v2354_v56 = vld [vmem:[#allocation5 + $0x64] ss:$24 sps:$4 sm:$0xff]   ;;  %v2358_v58 = vld [vmem:[#allocation5 + $0x60] ss:$24 sps:$4 sm:$0xff]  }
  0x64   : > { %1376 = vmatpush1.bf16.msra.mxu1 %v2347_v51  ;;  %v2353_v55 = vld [vmem:[#allocation5 + $0x38] ss:$24 sps:$4 sm:$0xff]   ;;  %1264 = vmatprep.subr.bf16.mxu0 %v2348_v52  ;;  %v2356_v57 = vld [vmem:[#allocation5 + $0x6c] ss:$24 sps:$4 sm:$0xff]   ;;  %v2359_v59 = vld [vmem:[#allocation5 + $0x68] ss:$24 sps:$4 sm:$0xff]  }
  0x65   : > { %314 = vadd.xlane.f32.xlu0 %v313_v24  ;;  %1377 = vmatprep.subr.bf16.mxu1 %v2350_v53  ;;  %v2360_v60 = vld [vmem:[#allocation5 + $0x94] ss:$24 sps:$4 sm:$0xff]   ;;  %v2364_v62 = vld [vmem:[#allocation5 + $0x90] ss:$24 sps:$4 sm:$0xff]   ;;  %v2366_v3 = vld [vmem:[#allocation5 + $0xc4] ss:$24 sps:$4 sm:$0xff]  }
  0x66   : > { %317 = vadd.xlane.f32.xlu1 %v316_v27  ;;  %v2362_v61 = vld [vmem:[#allocation5 + $0x9c] ss:$24 sps:$4 sm:$0xff]   ;;  %v2365_v63 = vld [vmem:[#allocation5 + $0x98] ss:$24 sps:$4 sm:$0xff]   ;;  %v2368_v7 = vld [vmem:[#allocation5 + $0xcc] ss:$24 sps:$4 sm:$0xff]  }
  0x67   : > { %1265 = vmatpush1.bf16.msra.mxu0 %v2352_v54  ;;  %v2370_v10 = vld [vmem:[#allocation5 + $0xc0] ss:$24 sps:$4 sm:$0xff]   ;;  %v2372_v16 = vld [vmem:[#allocation5 + $0xf4] ss:$24 sps:$4 sm:$0xff]   ;;  %v2376_v24 = vld [vmem:[#allocation5 + $0xf0] ss:$24 sps:$4 sm:$0xff]  }
  0x68   : > { %1378 = vmatpush1.bf16.msra.mxu1 %v2353_v55  ;;  %1266 = vmatprep.subr.bf16.mxu0 %v2354_v56  ;;  %v2371_v11 = vld [vmem:[#allocation5 + $0xc8] ss:$24 sps:$4 sm:$0xff]   ;;  %v2374_v17 = vld [vmem:[#allocation5 + $0xfc] ss:$24 sps:$4 sm:$0xff]   ;;  %v2377_v27 = vld [vmem:[#allocation5 + $0xf8] ss:$24 sps:$4 sm:$0xff]  }
  0x69   : > { %320 = vadd.xlane.f32.xlu0 %v319_v30  ;;  %1379 = vmatprep.subr.bf16.mxu1 %v2356_v57  ;;  %v2378_v30 = vld [vmem:[#allocation5 + $0x124] ss:$24 sps:$4 sm:$0xff]   ;;  %v2394_v50 = vld [vmem:[#allocation5 + $0x180] ss:$24 sps:$4 sm:$0xff]   ;;  %v2396_v52 = vld [vmem:[#allocation5 + $0x1b4] ss:$24 sps:$4 sm:$0xff]  }
  0x6a   : > { %323 = vadd.xlane.f32.xlu1 %v322_v33  ;;  %v2380_v33 = vld [vmem:[#allocation5 + $0x12c] ss:$24 sps:$4 sm:$0xff]   ;;  %v2395_v51 = vld [vmem:[#allocation5 + $0x188] ss:$24 sps:$4 sm:$0xff]   ;;  %v2398_v53 = vld [vmem:[#allocation5 + $0x1bc] ss:$24 sps:$4 sm:$0xff]  }
  0x6b   : > { %1267 = vmatpush1.bf16.msra.mxu0 %v2358_v58  ;;  %v2390_v48 = vld [vmem:[#allocation5 + $0x184] ss:$24 sps:$4 sm:$0xff]   ;;  %s2580_s24 = sshll.u32 %s2654_s12, 4  ;;  %s2581_s24 = int_to_ptr.vmem [resolvable:$false] %s2580_s24 }
  0x6c   : > { %1380 = vmatpush1.bf16.msra.mxu1 %v2359_v59  ;;  %1268 = vmatprep.subr.bf16.mxu0 %v2360_v60  ;;  %v2392_v49 = vld [vmem:[#allocation5 + $0x18c] ss:$24 sps:$4 sm:$0xff]   ;;  %s2582_s26 = scalar_lea.vmem %s2581_s24, 12288  ;;  %p2583_p10 = scmp.lt.s32.totalorder %s3496_s28, %s2581_s24 }
  0x6d   : > { %326 = vadd.xlane.f32.xlu0 %v325_v36  ;;  %1381 = vmatprep.subr.bf16.mxu1 %v2362_v61  ;;  %v2382_v36 = vld [vmem:[#allocation5 + $0x120] ss:$24 sps:$4 sm:$0xff]   ;;  %p2584_p13 = scmp.lt.s32.totalorder %s2582_s26, %s2576_s11 }
  0x6e   : > { %329 = vadd.xlane.f32.xlu1 %v328_v39  ;;  %v2383_v39 = vld [vmem:[#allocation5 + $0x128] ss:$24 sps:$4 sm:$0xff]  }
  0x6f   : > { %1269 = vmatpush1.bf16.msra.mxu0 %v2364_v62  ;;  %p2585_p3 = por %p2584_p13, %p2583_p10 }
  0x70   : > { %1382 = vmatpush1.bf16.msra.mxu1 %v2365_v63  ;;  %1270 = vmatprep.subr.bf16.mxu0 %v2366_v3 }
  0x71   : > { %332 = vadd.xlane.f32.xlu0 %v331_v42  ;;  %1383 = vmatprep.subr.bf16.mxu1 %v2368_v7  ;;  %v2384_v42 = vld [vmem:[#allocation5 + $0x154] ss:$24 sps:$4 sm:$0xff]   ;;  %p2586_p7 = pnand %p2585_p3, %p2579_p8 }
  0x72   : > { %335 = vadd.xlane.f32.xlu1 %v334_v45  ;;  %v2386_v45 = vld [vmem:[#allocation5 + $0x15c] ss:$24 sps:$4 sm:$0xff]  }
  0x73   : > { %1271 = vmatpush1.bf16.msra.mxu0 %v2370_v10 }
  0x74   : > { %1384 = vmatpush1.bf16.msra.mxu1 %v2371_v11  ;;  %1272 = vmatprep.subr.bf16.mxu0 %v2372_v16 }
  0x75   : > { %338 = vadd.xlane.f32.xlu0 %v337_v46  ;;  %1385 = vmatprep.subr.bf16.mxu1 %v2374_v17  ;;  %v2388_v46 = vld [vmem:[#allocation5 + $0x150] ss:$24 sps:$4 sm:$0xff]  }
  0x76   : > { %341 = vadd.xlane.f32.xlu1 %v340_v47  ;;  %v2389_v47 = vld [vmem:[#allocation5 + $0x158] ss:$24 sps:$4 sm:$0xff]  }
  0x77   : > { %1273 = vmatpush1.bf16.msra.mxu0 %v2376_v24 }
  0x78   : > { %1386 = vmatpush1.bf16.msra.mxu1 %v2377_v27  ;;  %1274 = vmatprep.subr.bf16.mxu0 %v2378_v30 }
  0x79   : > { %1387 = vmatprep.subr.bf16.mxu1 %v2380_v33 }
  0x7b   : > { %1275 = vmatpush1.bf16.msra.mxu0 %v2382_v36 }
  0x7c   : > { %1388 = vmatpush1.bf16.msra.mxu1 %v2383_v39  ;;  %1276 = vmatprep.subr.bf16.mxu0 %v2384_v42 }
  0x7d   : > { %1389 = vmatprep.subr.bf16.mxu1 %v2386_v45 }
  0x7f   : > { %1277 = vmatpush1.bf16.msra.mxu0 %v2388_v46 }
  0x80   : > { %1390 = vmatpush1.bf16.msra.mxu1 %v2389_v47  ;;  %1278 = vmatprep.subr.bf16.mxu0 %v2390_v48 }
  0x81   : > { %1391 = vmatprep.subr.bf16.mxu1 %v2392_v49 }
  0x83   : > { %1279 = vmatpush1.bf16.msra.mxu0 %v2394_v50 }
  0x84   : > { %1392 = vmatpush1.bf16.msra.mxu1 %v2395_v51  ;;  %1280 = vmatprep.subr.bf16.mxu0 %v2396_v52 }
  0x85   : > { %1393 = vmatprep.subr.bf16.mxu1 %v2398_v53 }
  0xe6   : > { %v297_v54 = vpop.xlane.xlu0 %296 }
  0xe7   : > { %v344_v55 = vmul.f32 0.00390625, %v297_v54  ;;  %v303_v56 = vpop.xlane.xlu1 %302 }
  0xe8   : > { %v346_v57 = vmul.f32 0.00390625, %v303_v56 }
  0xe9   : > { %v2969_v58 = vsub.f32 %v2841_v0, %v344_v55  ;;  %v2972_v59 = vsub.f32 %v2844_v1, %v344_v55 }
  0xea   : > { %v2975_v60 = vsub.f32 %v2847_v2, %v346_v57  ;;  %v2978_v61 = vsub.f32 %v2852_v4, %v346_v57  ;;  %v300_v62 = vpop.xlane.xlu0 %299 }
  0xeb   : > { %v345_v63 = vmul.f32 0.00390625, %v300_v62  ;;  %v306_v3 = vpop.xlane.xlu1 %305  ;;  %v392_v7 = vmul.f32 %v2969_v58, %v2969_v58  ;;  %v393_v10 = vmul.f32 %v2972_v59, %v2972_v59 }
  0xec   : > { %v347_v0 = vmul.f32 0.00390625, %v306_v3  ;;  %v396_v1 = vmul.f32 %v2975_v60, %v2975_v60  ;;  %v397_v2 = vmul.f32 %v2978_v61, %v2978_v61 }
  0xed   : > { %v2989_v11 = vsub.f32 %v2855_v5, %v345_v63  ;;  %v2992_v4 = vsub.f32 %v2858_v6, %v345_v63  ;;  %v424_v16 = vadd.f32 %v393_v10, %v392_v7 }
  0xee   : > { %v2995_v17 = vsub.f32 %v2863_v8, %v347_v0  ;;  %v2998_v24 = vsub.f32 %v2866_v9, %v347_v0  ;;  %v309_v27 = vpop.xlane.xlu0 %308  ;;  %v430_v36 = vadd.f32 %v397_v2, %v396_v1 }
  0xef   : > { %v348_v30 = vmul.f32 0.00390625, %v309_v27  ;;  %425 = vadd.xlane.f32.xlu0 %v424_v16  ;;  %v312_v33 = vpop.xlane.xlu1 %311  ;;  %v394_v39 = vmul.f32 %v2989_v11, %v2989_v11  ;;  %v395_v5 = vmul.f32 %v2992_v4, %v2992_v4 }
  0xf0   : > { %v349_v6 = vmul.f32 0.00390625, %v312_v33  ;;  %v398_v42 = vmul.f32 %v2995_v17, %v2995_v17  ;;  %v399_v8 = vmul.f32 %v2998_v24, %v2998_v24 }
  0xf1   : > { %v3009_v9 = vsub.f32 %v2873_v12, %v348_v30  ;;  %v3012_v45 = vsub.f32 %v2876_v13, %v348_v30  ;;  %v427_v46 = vadd.f32 %v395_v5, %v394_v39 }
  0xf2   : > { %v3015_v47 = vsub.f32 %v2879_v14, %v349_v6  ;;  %v3018_v48 = vsub.f32 %v2882_v15, %v349_v6  ;;  %v315_v49 = vpop.xlane.xlu0 %314  ;;  %v433_v52 = vadd.f32 %v399_v8, %v398_v42  ;;  %v2400_v42 = vld [vmem:[#allocation5 + $0x1b0] ss:$24 sps:$4 sm:$0xff]  }
  0xf3   : > { %v350_v50 = vmul.f32 0.00390625, %v315_v49  ;;  %431 = vadd.xlane.f32.xlu0 %v430_v36  ;;  %428 = vadd.xlane.f32.xlu1 %v427_v46  ;;  %v318_v51 = vpop.xlane.xlu1 %317  ;;  %v400_v12 = vmul.f32 %v3009_v9, %v3009_v9  ;;  %v401_v13 = vmul.f32 %v3012_v45, %v3012_v45  ;;  %v2401_v8 = vld [vmem:[#allocation5 + $0x1b8] ss:$24 sps:$4 sm:$0xff]  }
  0xf4   : > { %v351_v53 = vmul.f32 0.00390625, %v318_v51  ;;  %v402_v14 = vmul.f32 %v3015_v47, %v3015_v47  ;;  %v403_v15 = vmul.f32 %v3018_v48, %v3018_v48  ;;  %1281 = vmatpush1.bf16.msra.mxu0 %v2400_v42  ;;  %1394 = vmatpush1.bf16.msra.mxu1 %v2401_v8  ;;  %v2413_v42 = vld [vmem:[#allocation5 + $0x218] ss:$24 sps:$4 sm:$0xff]  }
  0xf5   : > { %v3029_v54 = vsub.f32 %v2889_v18, %v350_v50  ;;  %v3032_v55 = vsub.f32 %v2892_v19, %v350_v50  ;;  %v436_v56 = vadd.f32 %v401_v13, %v400_v12 }
  0xf6   : > { %v3035_v57 = vsub.f32 %v2895_v20, %v351_v53  ;;  %v3038_v62 = vsub.f32 %v2898_v21, %v351_v53  ;;  %v321_v63 = vpop.xlane.xlu0 %320  ;;  %v439_v10 = vadd.f32 %v403_v15, %v402_v14  ;;  %v2402_v15 = vld [vmem:[#allocation5 + $0x1e4] ss:$24 sps:$4 sm:$0xff]  }
  0xf7   : > { %v352_v3 = vmul.f32 0.00390625, %v321_v63  ;;  %434 = vadd.xlane.f32.xlu1 %v433_v52  ;;  %437 = vadd.xlane.f32.xlu0 %v436_v56  ;;  %v324_v7 = vpop.xlane.xlu1 %323  ;;  %v404_v18 = vmul.f32 %v3029_v54, %v3029_v54  ;;  %v405_v19 = vmul.f32 %v3032_v55, %v3032_v55 }
  0xf8   : > { %v353_v0 = vmul.f32 0.00390625, %v324_v7  ;;  %v406_v20 = vmul.f32 %v3035_v57, %v3035_v57  ;;  %v407_v21 = vmul.f32 %v3038_v62, %v3038_v62  ;;  %1282 = vmatprep.subr.bf16.mxu0 %v2402_v15 }
  0xf9   : > { %v3049_v1 = vsub.f32 %v2901_v22, %v352_v3  ;;  %v3052_v2 = vsub.f32 %v2904_v23, %v352_v3  ;;  %v442_v16 = vadd.f32 %v405_v19, %v404_v18  ;;  %v2406_v18 = vld [vmem:[#allocation5 + $0x1e0] ss:$24 sps:$4 sm:$0xff]  }
  0xfa   : > { %v3055_v27 = vsub.f32 %v2909_v25, %v353_v0  ;;  %v3058_v30 = vsub.f32 %v2912_v26, %v353_v0  ;;  %v327_v33 = vpop.xlane.xlu0 %326  ;;  %v445_v5 = vadd.f32 %v407_v21, %v406_v20  ;;  %v2407_v19 = vld [vmem:[#allocation5 + $0x1e8] ss:$24 sps:$4 sm:$0xff]   ;;  %1283 = vmatpush1.bf16.msra.mxu0 %v2406_v18  ;;  %v2428_v18 = vld [vmem:[#allocation5 + $0x2ac] ss:$24 sps:$4 sm:$0xff]  }
  0xfb   : > { %v354_v36 = vmul.f32 0.00390625, %v327_v33  ;;  %440 = vadd.xlane.f32.xlu1 %v439_v10  ;;  %443 = vadd.xlane.f32.xlu0 %v442_v16  ;;  %v330_v39 = vpop.xlane.xlu1 %329  ;;  %v408_v22 = vmul.f32 %v3049_v1, %v3049_v1  ;;  %v409_v23 = vmul.f32 %v3052_v2, %v3052_v2 }
  0xfc   : > { %v355_v6 = vmul.f32 0.00390625, %v330_v39  ;;  %v410_v25 = vmul.f32 %v3055_v27, %v3055_v27  ;;  %v411_v26 = vmul.f32 %v3058_v30, %v3058_v30 }
  0xfd   : > { %v3069_v46 = vsub.f32 %v2917_v28, %v354_v36  ;;  %v3072_v49 = vsub.f32 %v2920_v29, %v354_v36  ;;  %v448_v50 = vadd.f32 %v409_v23, %v408_v22  ;;  %v2410_v22 = vld [vmem:[#allocation5 + $0x21c] ss:$24 sps:$4 sm:$0xff]  }
  0xfe   : > { %v3075_v51 = vsub.f32 %v2925_v31, %v355_v6  ;;  %v3078_v52 = vsub.f32 %v2928_v32, %v355_v6  ;;  %v333_v12 = vpop.xlane.xlu0 %332  ;;  %v451_v14 = vadd.f32 %v411_v26, %v410_v25  ;;  %v2404_v31 = vld [vmem:[#allocation5 + $0x1ec] ss:$24 sps:$4 sm:$0xff]   ;;  %v2412_v26 = vld [vmem:[#allocation5 + $0x210] ss:$24 sps:$4 sm:$0xff]  }
  0xff   : > { %v356_v13 = vmul.f32 0.00390625, %v333_v12  ;;  %446 = vadd.xlane.f32.xlu1 %v445_v5  ;;  %449 = vadd.xlane.f32.xlu0 %v448_v50  ;;  %v336_v53 = vpop.xlane.xlu1 %335  ;;  %v412_v28 = vmul.f32 %v3069_v46, %v3069_v46  ;;  %v413_v29 = vmul.f32 %v3072_v49, %v3072_v49  ;;  %v2408_v5 = vld [vmem:[#allocation5 + $0x214] ss:$24 sps:$4 sm:$0xff]  }
 0x100   : > { %v357_v56 = vmul.f32 0.00390625, %v336_v53  ;;  %v414_v32 = vmul.f32 %v3075_v51, %v3075_v51  ;;  %v415_v63 = vmul.f32 %v3078_v52, %v3078_v52  ;;  %1395 = vmatprep.subr.bf16.mxu1 %v2404_v31  ;;  %1284 = vmatprep.subr.bf16.mxu0 %v2408_v5  ;;  %v2416_v53 = vld [vmem:[#allocation5 + $0x24c] ss:$24 sps:$4 sm:$0xff]  }
 0x101   : > { %v3089_v3 = vsub.f32 %v2933_v34, %v356_v13  ;;  %v3092_v7 = vsub.f32 %v2936_v35, %v356_v13  ;;  %v454_v10 = vadd.f32 %v413_v29, %v412_v28  ;;  %1396 = vmatpush1.bf16.msra.mxu1 %v2407_v19  ;;  %1285 = vmatpush1.bf16.msra.mxu0 %v2412_v26  ;;  %v2418_v28 = vld [vmem:[#allocation5 + $0x240] ss:$24 sps:$4 sm:$0xff]   ;;  %v2420_v31 = vld [vmem:[#allocation5 + $0x274] ss:$24 sps:$4 sm:$0xff]  }
 0x102   : > { %v3095_v0 = vsub.f32 %v2941_v37, %v357_v56  ;;  %v3098_v20 = vsub.f32 %v2944_v38, %v357_v56  ;;  %v339_v21 = vpop.xlane.xlu0 %338  ;;  %v457_v33 = vadd.f32 %v415_v63, %v414_v32  ;;  %1397 = vmatprep.subr.bf16.mxu1 %v2410_v22  ;;  %v2419_v29 = vld [vmem:[#allocation5 + $0x248] ss:$24 sps:$4 sm:$0xff]   ;;  %v2422_v56 = vld [vmem:[#allocation5 + $0x27c] ss:$24 sps:$4 sm:$0xff]   ;;  %v2425_v63 = vld [vmem:[#allocation5 + $0x278] ss:$24 sps:$4 sm:$0xff]  }
 0x103   : > { %v358_v16 = vmul.f32 0.00390625, %v339_v21  ;;  %452 = vadd.xlane.f32.xlu1 %v451_v14  ;;  %455 = vadd.xlane.f32.xlu0 %v454_v10  ;;  %v342_v34 = vpop.xlane.xlu1 %341  ;;  %v416_v35 = vmul.f32 %v3089_v3, %v3089_v3  ;;  %v417_v36 = vmul.f32 %v3092_v7, %v3092_v7  ;;  %v2424_v32 = vld [vmem:[#allocation5 + $0x270] ss:$24 sps:$4 sm:$0xff]   ;;  %v2426_v10 = vld [vmem:[#allocation5 + $0x2a4] ss:$24 sps:$4 sm:$0xff]  }
 0x104   : > { %v359_v39 = vmul.f32 0.00390625, %v342_v34  ;;  %v418_v37 = vmul.f32 %v3095_v0, %v3095_v0  ;;  %v419_v38 = vmul.f32 %v3098_v20, %v3098_v20  ;;  %v2430_v19 = vld [vmem:[#allocation5 + $0x2a0] ss:$24 sps:$4 sm:$0xff]   ;;  %v2434_v34 = vld [vmem:[#allocation5 + $0x2dc] ss:$24 sps:$4 sm:$0xff]  }
 0x105   : > { %v3109_v23 = vsub.f32 %v2949_v40, %v358_v16  ;;  %v3112_v6 = vsub.f32 %v2952_v41, %v358_v16  ;;  %v460_v25 = vadd.f32 %v417_v36, %v416_v35  ;;  %1398 = vmatpush1.bf16.msra.mxu1 %v2413_v42  ;;  %v2431_v21 = vld [vmem:[#allocation5 + $0x2a8] ss:$24 sps:$4 sm:$0xff]   ;;  %v2432_v16 = vld [vmem:[#allocation5 + $0x2d4] ss:$24 sps:$4 sm:$0xff]   ;;  %v2437_v35 = vld [vmem:[#allocation5 + $0x2d8] ss:$24 sps:$4 sm:$0xff]  }
 0x106   : > { %v3115_v8 = vsub.f32 %v2957_v43, %v359_v39  ;;  %v3118_v50 = vsub.f32 %v2960_v44, %v359_v39  ;;  %v463_v12 = vadd.f32 %v419_v38, %v418_v37  ;;  %v2414_v44 = vld [vmem:[#allocation5 + $0x244] ss:$24 sps:$4 sm:$0xff]   ;;  %1399 = vmatprep.subr.bf16.mxu1 %v2416_v53  ;;  %v2440_v36 = vld [vmem:[#allocation5 + $0x14] ss:$24 sps:$4 sm:$0xff]   ;;  %v553_v38 = vlaneseq }
 0x107   : > { %458 = vadd.xlane.f32.xlu1 %v457_v33  ;;  %461 = vadd.xlane.f32.xlu0 %v460_v25  ;;  %v420_v40 = vmul.f32 %v3109_v23, %v3109_v23  ;;  %v421_v41 = vmul.f32 %v3112_v6, %v3112_v6  ;;  %v2436_v33 = vld [vmem:[#allocation5 + $0x2d0] ss:$24 sps:$4 sm:$0xff]  }
 0x108   : > { %v422_v13 = vmul.f32 %v3115_v8, %v3115_v8  ;;  %v423_v43 = vmul.f32 %v3118_v50, %v3118_v50  ;;  %1286 = vmatprep.subr.bf16.mxu0 %v2414_v44 }
 0x109   : > { %v466_v14 = vadd.f32 %v421_v41, %v420_v40  ;;  %1287 = vmatpush1.bf16.msra.mxu0 %v2418_v28  ;;  %1400 = vmatpush1.bf16.msra.mxu1 %v2419_v29 }
 0x10a   : > { %v469_v15 = vadd.f32 %v423_v43, %v422_v13  ;;  %1288 = vmatprep.subr.bf16.mxu0 %v2420_v31  ;;  %1401 = vmatprep.subr.bf16.mxu1 %v2422_v56  ;;  %v293_v31 = vld [vmem:[%s3543_s1] sm:$0x3] }
 0x10b   : > { %464 = vadd.xlane.f32.xlu1 %v463_v12  ;;  %467 = vadd.xlane.f32.xlu0 %v466_v14  ;;  %v3128_v12 = vshrl.u32 %v553_v38, 7 }
 0x10d   : > { %1289 = vmatpush1.bf16.msra.mxu0 %v2424_v32  ;;  %1402 = vmatpush1.bf16.msra.mxu1 %v2425_v63  ;;  %v3131_v14 = vsub.s32 1, %v3128_v12  ;;  %v3134_v28 = vsub.s32 0, %v3128_v12 }
 0x10e   : > { %1290 = vmatprep.subr.bf16.mxu0 %v2426_v10  ;;  %1403 = vmatprep.subr.bf16.mxu1 %v2428_v18 }
 0x10f   : > { %470 = vadd.xlane.f32.xlu1 %v469_v15  ;;  %v3140_v18 = vrot.slane %v293_v31, %v3131_v14 }
 0x111   : > { %1291 = vmatpush1.bf16.msra.mxu0 %v2430_v19  ;;  %1404 = vmatpush1.bf16.msra.mxu1 %v2431_v21 }
 0x112   : > { %1292 = vmatprep.subr.bf16.mxu0 %v2432_v16  ;;  %1405 = vmatprep.subr.bf16.mxu1 %v2434_v34  ;;  %v294_v16 = vld [vmem:[%s3544_s2] sm:$0x3]  ;;  %v3146_v34 = vrot.slane %v293_v31, %v3134_v28 }
 0x115   : > { %1293 = vmatpush1.bf16.msra.mxu0 %v2436_v33  ;;  %1406 = vmatpush1.bf16.msra.mxu1 %v2437_v35 }
 0x116   : > { %1488 = vmatprep.subr.bf16.mxu0 %v2440_v36  ;;  %2245 = vmatprep.subr.bf16.mxu1 %v2440_v36 }
 0x17c   : > { %v426_v39 = vpop.xlane.xlu0 %425 }
 0x17d   : > { %v472_v37 = vmul.f32 0.00390625, %v426_v39 }
 0x17f   : > { %v488_v5 = vadd.f32 1e-05, %v472_v37 }
 0x180   : > { %v429_v22 = vpop.xlane.xlu1 %428  ;;  %v432_v25 = vpop.xlane.xlu0 %431 }
 0x181   : > { %2486 = vrsqrt.f32 %v488_v5  ;;  %v473_v26 = vmul.f32 0.00390625, %v429_v22  ;;  %v474_v42 = vmul.f32 0.00390625, %v432_v25  ;;  %v3152_v22 = vrot.slane %v294_v16, %v3131_v14 }
 0x183   : > { %v489_v40 = vadd.f32 1e-05, %v473_v26  ;;  %v490_v41 = vadd.f32 1e-05, %v474_v42 }
 0x184   : > { %v435_v13 = vpop.xlane.xlu1 %434  ;;  %v438_v43 = vpop.xlane.xlu0 %437 }
 0x185   : > { %2488 = vrsqrt.f32 %v489_v40  ;;  %v475_v44 = vmul.f32 0.00390625, %v435_v13  ;;  %v476_v53 = vmul.f32 0.00390625, %v438_v43  ;;  %v3156_v40 = vrot.slane %v294_v16, %v3134_v28 }
 0x186   : > { %2490 = vrsqrt.f32 %v490_v41 }
 0x187   : > { %v491_v29 = vadd.f32 1e-05, %v475_v44  ;;  %v492_v15 = vadd.f32 1e-05, %v476_v53 }
 0x188   : > { %v441_v56 = vpop.xlane.xlu1 %440  ;;  %v444_v32 = vpop.xlane.xlu0 %443 }
 0x189   : > { %2492 = vrsqrt.f32 %v491_v29  ;;  %v477_v63 = vmul.f32 0.00390625, %v441_v56  ;;  %v478_v10 = vmul.f32 0.00390625, %v444_v32 }
 0x18a   : > { %2494 = vrsqrt.f32 %v492_v15 }
 0x18b   : > { %v2487_v19 = vpop.eup %2486  ;;  %v493_v21 = vadd.f32 1e-05, %v477_v63  ;;  %v494_v37 = vadd.f32 1e-05, %v478_v10 }
 0x18c   : > { %v447_v33 = vpop.xlane.xlu1 %446  ;;  %v521_v35 = vmul.f32 %v2487_v19, %v2972_v59  ;;  %v520_v36 = vmul.f32 %v2487_v19, %v2969_v58  ;;  %v450_v38 = vpop.xlane.xlu0 %449 }
 0x18d   : > { %2496 = vrsqrt.f32 %v493_v21  ;;  %v479_v39 = vmul.f32 0.00390625, %v447_v33  ;;  %v480_v43 = vmul.f32 0.00390625, %v450_v38 }
 0x18e   : > { %v564_v5 = vmul.f32 %v3140_v18, %v521_v35  ;;  %v563_v42 = vmul.f32 %v3146_v34, %v520_v36  ;;  %v2438_v36 = vld [vmem:[#allocation5 + $0x10] ss:$24 sps:$4 sm:$0xff]  }
 0x18f   : > { %v2489_v25 = vpop.eup %2488  ;;  %v495_v26 = vadd.f32 1e-05, %v479_v39  ;;  %v496_v33 = vadd.f32 1e-05, %v480_v43 }
 0x190   : > { %v2491_v41 = vpop.eup %2490  ;;  %v453_v59 = vpop.xlane.xlu1 %452  ;;  %v523_v58 = vmul.f32 %v2489_v25, %v2992_v4  ;;  %v522_v13 = vmul.f32 %v2489_v25, %v2989_v11  ;;  %v607_v15 = vadd.f32 %v3152_v22, %v564_v5  ;;  %v606_v63 = vadd.f32 %v3156_v40, %v563_v42 }
 0x191   : > { %2498 = vrsqrt.f32 %v495_v26  ;;  %v481_v44 = vmul.f32 0.00390625, %v453_v59  ;;  %v525_v53 = vmul.f32 %v2491_v41, %v2978_v61  ;;  %v524_v11 = vmul.f32 %v2491_v41, %v2975_v60  ;;  %v456_v60 = vpop.xlane.xlu0 %455  ;;  %v2443_v26 = vld [vmem:[#allocation5 + $0x44] ss:$24 sps:$4 sm:$0xff]  }
 0x192   : > { %2500 = vrsqrt.f32 %v494_v37  ;;  %v566_v29 = vmul.f32 %v3140_v18, %v523_v58  ;;  %v565_v31 = vmul.f32 %v3146_v34, %v522_v13  ;;  %v482_v13 = vmul.f32 0.00390625, %v456_v60 }
 0x193   : > { %v2493_v56 = vpop.eup %2492  ;;  %v497_v32 = vadd.f32 1e-05, %v481_v44  ;;  %v568_v4 = vmul.f32 %v3140_v18, %v525_v53  ;;  %v2441_v44 = vld [vmem:[#allocation5 + $0x40] ss:$24 sps:$4 sm:$0xff]  }
 0x194   : > { %v609_v10 = vadd.f32 %v3152_v22, %v566_v29  ;;  %v608_v19 = vadd.f32 %v3156_v40, %v565_v31  ;;  %v527_v61 = vmul.f32 %v2493_v56, %v2998_v24  ;;  %v526_v21 = vmul.f32 %v2493_v56, %v2995_v17  ;;  %v2495_v16 = vpop.eup %2494  ;;  %v459_v35 = vpop.xlane.xlu1 %458 }
 0x195   : > { %2502 = vrsqrt.f32 %v497_v32  ;;  %v611_v25 = vadd.f32 %v3152_v22, %v568_v4  ;;  %v567_v24 = vmul.f32 %v3146_v34, %v524_v11  ;;  %v483_v42 = vmul.f32 0.00390625, %v459_v35  ;;  %v462_v4 = vpop.xlane.xlu0 %461 }
 0x196   : > { %v3171_v39 = vpack.c.bf16 %v609_v10, %v607_v15  ;;  %v3173_v37 = vpack.c.bf16 %v608_v19, %v606_v63  ;;  %v570_v38 = vmul.f32 %v3140_v18, %v527_v61  ;;  %v569_v17 = vmul.f32 %v3146_v34, %v526_v21  ;;  %v2446_v15 = vld [vmem:[#allocation5 + $0x74] ss:$24 sps:$4 sm:$0xff]   ;;  %v2444_v21 = vld [vmem:[#allocation5 + $0x70] ss:$24 sps:$4 sm:$0xff]  }
 0x197   : > { %v2497_v5 = vpop.eup %2496  ;;  %v529_v59 = vmul.f32 %v2495_v16, %v3012_v45  ;;  %2504 = vrsqrt.f32 %v496_v33  ;;  %v499_v56 = vadd.f32 1e-05, %v483_v42  ;;  %v610_v32 = vadd.f32 %v3156_v40, %v567_v24  ;;  %v2447_v24 = vld [vmem:[#allocation5 + $0xa0] ss:$24 sps:$4 sm:$0xff]  }
 0x198   : > { %1294 = vmatprep.mubr.bf16.mxu0 %v3171_v39  ;;  %1407 = vmatprep.mubr.bf16.mxu1 %v3171_v39  ;;  %v613_v41 = vadd.f32 %v3152_v22, %v570_v38  ;;  %v531_v58 = vmul.f32 %v2497_v5, %v3018_v48  ;;  %v612_v53 = vadd.f32 %v3156_v40, %v569_v17  ;;  %v465_v11 = vpop.xlane.xlu1 %464  ;;  %v498_v61 = vadd.f32 1e-05, %v482_v13  ;;  %v2452_v17 = vld [vmem:[#allocation5 + $0xd4] ss:$24 sps:$4 sm:$0xff]  }
 0x199   : > { %1295 = vmatmul.mubr.bf16.vlgmr.msra.gmra.mrb[0].mxu0 %v3173_v37  ;;  %1408 = vmatmul.mubr.bf16.vlgmr.msra.gmra.mrb[0].mxu1 %v3173_v37  ;;  %v572_v45 = vmul.f32 %v3140_v18, %v529_v59  ;;  %v530_v63 = vmul.f32 %v2497_v5, %v3015_v47  ;;  %v528_v19 = vmul.f32 %v2495_v16, %v3009_v9  ;;  %2506 = vrsqrt.f32 %v499_v56  ;;  %v2449_v9 = vld [vmem:[#allocation5 + $0xa4] ss:$24 sps:$4 sm:$0xff]   ;;  %v2450_v56 = vld [vmem:[#allocation5 + $0xd0] ss:$24 sps:$4 sm:$0xff]  }
 0x19a   : > { %1489 = vmatpush1.bf16.msra.mxu0 %v2438_v36  ;;  %2261 = vmatpush1.bf16.msra.mxu1 %v2438_v36  ;;  %v3186_v43 = vpack.c.bf16 %v613_v41, %v611_v25  ;;  %v574_v48 = vmul.f32 %v3140_v18, %v531_v58  ;;  %v3197_v33 = vpack.c.bf16 %v612_v53, %v610_v32  ;;  %v484_v5 = vmul.f32 0.00390625, %v462_v4 }
 0x19b   : > { %v2499_v29 = vpop.eup %2498  ;;  %1490 = vmatprep.subr.bf16.mxu0 %v2443_v26  ;;  %2246 = vmatprep.subr.bf16.mxu1 %v2443_v26  ;;  %v615_v36 = vadd.f32 %v3152_v22, %v572_v45  ;;  %v573_v47 = vmul.f32 %v3146_v34, %v530_v63  ;;  %v485_v60 = vmul.f32 0.00390625, %v465_v11  ;;  %2508 = vrsqrt.f32 %v498_v61  ;;  %v468_v63 = vpop.xlane.xlu0 %467  ;;  %v2453_v61 = vld [vmem:[#allocation5 + $0x100] ss:$24 sps:$4 sm:$0xff]  }
 0x19c   : > { %v2501_v31 = vpop.eup %2500  ;;  %1304 = vmatprep.mubr.bf16.mxu0 %v3186_v43  ;;  %1417 = vmatprep.mubr.bf16.mxu1 %v3186_v43  ;;  %v617_v10 = vadd.f32 %v3152_v22, %v574_v48  ;;  %v535_v35 = vmul.f32 %v2499_v29, %v3038_v62  ;;  %v571_v62 = vmul.f32 %v3146_v34, %v528_v19  ;;  %v500_v58 = vadd.f32 1e-05, %v484_v5 }
 0x19d   : > { %v533_v38 = vmul.f32 %v2501_v31, %v3032_v55  ;;  %v616_v42 = vadd.f32 %v3156_v40, %v573_v47  ;;  %v534_v59 = vmul.f32 %v2499_v29, %v3035_v57  ;;  %v501_v13 = vadd.f32 1e-05, %v485_v60 }
 0x19e   : > { %1491 = vmatpush1.bf16.msra.mxu0 %v2441_v44  ;;  %2262 = vmatpush1.bf16.msra.mxu1 %v2441_v44  ;;  %v3205_v25 = vpack.c.bf16 %v617_v10, %v615_v36  ;;  %v578_v26 = vmul.f32 %v3140_v18, %v535_v35  ;;  %v471_v44 = vpop.xlane.xlu1 %470  ;;  %v614_v53 = vadd.f32 %v3156_v40, %v571_v62  ;;  %v2455_v10 = vld [vmem:[#allocation5 + $0x104] ss:$24 sps:$4 sm:$0xff]   ;;  %v486_v19 = vmul.f32 0.00390625, %v468_v63  ;;  %v2458_v35 = vld [vmem:[#allocation5 + $0x134] ss:$24 sps:$4 sm:$0xff]  }
 0x19f   : > { %1492 = vmatprep.subr.bf16.mxu0 %v2446_v15  ;;  %2247 = vmatprep.subr.bf16.mxu1 %v2446_v15  ;;  %v2503_v16 = vpop.eup %2502  ;;  %v576_v41 = vmul.f32 %v3140_v18, %v533_v38  ;;  %v532_v45 = vmul.f32 %v2501_v31, %v3029_v54  ;;  %v577_v4 = vmul.f32 %v3146_v34, %v534_v59  ;;  %2510 = vrsqrt.f32 %v501_v13  ;;  %v2461_v59 = vld [vmem:[#allocation5 + $0x164] ss:$24 sps:$4 sm:$0xff]   ;;  %v2459_v13 = vld [vmem:[#allocation5 + $0x160] ss:$24 sps:$4 sm:$0xff]  }
 0x1a0   : > { %v621_v15 = vadd.f32 %v3152_v22, %v578_v26  ;;  %v539_v48 = vmul.f32 %v2503_v16, %v3058_v30  ;;  %v3219_v57 = vpack.c.bf16 %v616_v42, %v614_v53  ;;  %v487_v11 = vmul.f32 0.00390625, %v471_v44 }
 0x1a1   : > { %1305 = vmatmul.mubr.bf16.gmra.mrb[4].mxu0 %v3197_v33  ;;  %1418 = vmatmul.mubr.bf16.gmra.mrb[4].mxu1 %v3197_v33  ;;  %v2505_v55 = vpop.eup %2504  ;;  %v619_v29 = vadd.f32 %v3152_v22, %v576_v41  ;;  %2512 = vrsqrt.f32 %v500_v58  ;;  %v620_v36 = vadd.f32 %v3156_v40, %v577_v4  ;;  %v538_v47 = vmul.f32 %v2503_v16, %v3055_v27 }
 0x1a2   : > { %1493 = vmatpush1.bf16.msra.mxu0 %v2444_v21  ;;  %2263 = vmatpush1.bf16.msra.mxu1 %v2444_v21  ;;  %v537_v32 = vmul.f32 %v2505_v55, %v3052_v2  ;;  %v575_v2 = vmul.f32 %v3146_v34, %v532_v45  ;;  %v582_v30 = vmul.f32 %v3140_v18, %v539_v48  ;;  %v503_v5 = vadd.f32 1e-05, %v487_v11 }
 0x1a3   : > { %1314 = vmatprep.mubr.bf16.mxu0 %v3205_v25  ;;  %1427 = vmatprep.mubr.bf16.mxu1 %v3205_v25  ;;  %v3225_v54 = vpack.c.bf16 %v621_v15, %v619_v29  ;;  %v2507_v31 = vpop.eup %2506  ;;  %v536_v62 = vmul.f32 %v2505_v55, %v3049_v1  ;;  %v581_v16 = vmul.f32 %v3146_v34, %v538_v47  ;;  %v2462_v29 = vld [vmem:[#allocation5 + $0x190] ss:$24 sps:$4 sm:$0xff]  }
 0x1a4   : > { %1494 = vmatprep.subr.bf16.mxu0 %v2449_v9  ;;  %2248 = vmatprep.subr.bf16.mxu1 %v2449_v9  ;;  %v580_v21 = vmul.f32 %v3140_v18, %v537_v32  ;;  %v618_v60 = vadd.f32 %v3156_v40, %v575_v2  ;;  %v625_v9 = vadd.f32 %v3152_v22, %v582_v30  ;;  %2514 = vrsqrt.f32 %v503_v5  ;;  %v2467_v2 = vld [vmem:[#allocation5 + $0x1c4] ss:$24 sps:$4 sm:$0xff]  }
 0x1a5   : > { %v2509_v38 = vpop.eup %2508  ;;  %v543_v26 = vmul.f32 %v2507_v31, %v3078_v52  ;;  %v579_v52 = vmul.f32 %v3146_v34, %v536_v62  ;;  %v624_v53 = vadd.f32 %v3156_v40, %v581_v16  ;;  %v542_v45 = vmul.f32 %v2507_v31, %v3075_v51  ;;  %v2465_v31 = vld [vmem:[#allocation5 + $0x1c0] ss:$24 sps:$4 sm:$0xff]  }
 0x1a6   : > { %1495 = vmatpush1.bf16.msra.mxu0 %v2447_v24  ;;  %2264 = vmatpush1.bf16.msra.mxu1 %v2447_v24  ;;  %v502_v24 = vadd.f32 1e-05, %v486_v19  ;;  %v623_v42 = vadd.f32 %v3152_v22, %v580_v21  ;;  %v3239_v27 = vpack.c.bf16 %v620_v36, %v618_v60  ;;  %v541_v41 = vmul.f32 %v2509_v38, %v3072_v49  ;;  %v2464_v49 = vld [vmem:[#allocation5 + $0x194] ss:$24 sps:$4 sm:$0xff]   ;;  %v2471_v16 = vld [vmem:[#allocation5 + $0x220] ss:$24 sps:$4 sm:$0xff]  }
 0x1a7   : > { %1496 = vmatprep.subr.bf16.mxu0 %v2452_v17  ;;  %2249 = vmatprep.subr.bf16.mxu1 %v2452_v17  ;;  %v2456_v17 = vld [vmem:[#allocation5 + $0x130] ss:$24 sps:$4 sm:$0xff]   ;;  %v586_v55 = vmul.f32 %v3140_v18, %v543_v26  ;;  %v622_v48 = vadd.f32 %v3156_v40, %v579_v52  ;;  %v540_v32 = vmul.f32 %v2509_v38, %v3069_v46 }
 0x1a8   : > { %v3245_v1 = vpack.c.bf16 %v625_v9, %v623_v42  ;;  %2516 = vrsqrt.f32 %v502_v24  ;;  %v584_v15 = vmul.f32 %v3140_v18, %v541_v41  ;;  %v2468_v9 = vld [vmem:[#allocation5 + $0x1f0] ss:$24 sps:$4 sm:$0xff]   ;;  %v2476_v41 = vld [vmem:[#allocation5 + $0x254] ss:$24 sps:$4 sm:$0xff]  }
 0x1a9   : > { %1315 = vmatmul.mubr.bf16.gmra.mrb[8].mxu0 %v3219_v57  ;;  %1428 = vmatmul.mubr.bf16.gmra.mrb[8].mxu1 %v3219_v57  ;;  %v2511_v58 = vpop.eup %2510  ;;  %v3259_v11 = vpack.c.bf16 %v624_v53, %v622_v48  ;;  %v2477_v48 = vld [vmem:[#allocation5 + $0x280] ss:$24 sps:$4 sm:$0xff]  }
 0x1aa   : > { %1497 = vmatpush1.bf16.msra.mxu0 %v2450_v56  ;;  %2265 = vmatpush1.bf16.msra.mxu1 %v2450_v56  ;;  %v629_v56 = vadd.f32 %v3152_v22, %v586_v55  ;;  %v547_v63 = vmul.f32 %v2511_v58, %v3098_v20  ;;  %v627_v51 = vadd.f32 %v3152_v22, %v584_v15  ;;  %v2479_v15 = vld [vmem:[#allocation5 + $0x284] ss:$24 sps:$4 sm:$0xff]  }
 0x1ab   : > { %1324 = vmatprep.mubr.bf16.mxu0 %v3225_v54  ;;  %1437 = vmatprep.mubr.bf16.mxu1 %v3225_v54  ;;  %v2513_v44 = vpop.eup %2512  ;;  %v583_v20 = vmul.f32 %v3146_v34, %v540_v32  ;;  %v2480_v32 = vld [vmem:[#allocation5 + $0x2b0] ss:$24 sps:$4 sm:$0xff]  }
 0x1ac   : > { %1498 = vmatprep.subr.bf16.mxu0 %v2455_v10  ;;  %2250 = vmatprep.subr.bf16.mxu1 %v2455_v10  ;;  %v545_v4 = vmul.f32 %v2513_v44, %v3092_v7  ;;  %v585_v10 = vmul.f32 %v3146_v34, %v542_v45  ;;  %v3265_v46 = vpack.c.bf16 %v629_v56, %v627_v51 }
 0x1ad   : > { %v590_v30 = vmul.f32 %v3140_v18, %v547_v63  ;;  %v626_v47 = vadd.f32 %v3156_v40, %v583_v20  ;;  %v544_v5 = vmul.f32 %v2513_v44, %v3089_v3  ;;  %v2474_v44 = vld [vmem:[#allocation5 + $0x250] ss:$24 sps:$4 sm:$0xff]  }
 0x1ae   : > { %1499 = vmatpush1.bf16.msra.mxu0 %v2453_v61  ;;  %2266 = vmatpush1.bf16.msra.mxu1 %v2453_v61  ;;  %v2515_v7 = vpop.eup %2514  ;;  %v588_v19 = vmul.f32 %v3140_v18, %v545_v4  ;;  %v2470_v61 = vld [vmem:[#allocation5 + $0x1f4] ss:$24 sps:$4 sm:$0xff]   ;;  %v628_v21 = vadd.f32 %v3156_v40, %v585_v10 }
 0x1af   : > { %1500 = vmatprep.subr.bf16.mxu0 %v2458_v35  ;;  %2251 = vmatprep.subr.bf16.mxu1 %v2458_v35  ;;  %v546_v35 = vmul.f32 %v2511_v58, %v3095_v0  ;;  %v633_v38 = vadd.f32 %v3152_v22, %v590_v30  ;;  %v551_v60 = vmul.f32 %v2515_v7, %v3118_v50 }
 0x1b0   : > { %v631_v62 = vadd.f32 %v3152_v22, %v588_v19  ;;  %v3279_v26 = vpack.c.bf16 %v628_v21, %v626_v47  ;;  %v587_v50 = vmul.f32 %v3146_v34, %v544_v5  ;;  %v550_v52 = vmul.f32 %v2515_v7, %v3115_v8 }
 0x1b1   : > { %1325 = vmatmul.mubr.bf16.gmra.mrb[12].mxu0 %v3239_v27  ;;  %1438 = vmatmul.mubr.bf16.gmra.mrb[12].mxu1 %v3239_v27  ;;  %v589_v0 = vmul.f32 %v3146_v34, %v546_v35  ;;  %v594_v42 = vmul.f32 %v3140_v18, %v551_v60 }
 0x1b2   : > { %1501 = vmatpush1.bf16.msra.mxu0 %v2456_v17  ;;  %2267 = vmatpush1.bf16.msra.mxu1 %v2456_v17  ;;  %v2517_v36 = vpop.eup %2516  ;;  %v2473_v17 = vld [vmem:[#allocation5 + $0x224] ss:$24 sps:$4 sm:$0xff]   ;;  %v3285_v3 = vpack.c.bf16 %v633_v38, %v631_v62  ;;  %v630_v55 = vadd.f32 %v3156_v40, %v587_v50 }
 0x1b3   : > { %1334 = vmatprep.mubr.bf16.mxu0 %v3245_v1  ;;  %1447 = vmatprep.mubr.bf16.mxu1 %v3245_v1  ;;  %v549_v24 = vmul.f32 %v2517_v36, %v3112_v6  ;;  %v632_v6 = vadd.f32 %v3156_v40, %v589_v0  ;;  %v637_v58 = vadd.f32 %v3152_v22, %v594_v42 }
 0x1b4   : > { %1502 = vmatprep.subr.bf16.mxu0 %v2461_v59  ;;  %2252 = vmatprep.subr.bf16.mxu1 %v2461_v59 }
 0x1b5   : > { %v592_v59 = vmul.f32 %v3140_v18, %v549_v24  ;;  %v593_v18 = vmul.f32 %v3146_v34, %v550_v52 }
 0x1b6   : > { %1503 = vmatpush1.bf16.msra.mxu0 %v2459_v13  ;;  %2268 = vmatpush1.bf16.msra.mxu1 %v2459_v13  ;;  %v548_v13 = vmul.f32 %v2517_v36, %v3109_v23  ;;  %v2482_v23 = vld [vmem:[#allocation5 + $0x2b4] ss:$24 sps:$4 sm:$0xff]  }
 0x1b7   : > { %1504 = vmatprep.subr.bf16.mxu0 %v2464_v49  ;;  %2253 = vmatprep.subr.bf16.mxu1 %v2464_v49  ;;  %v650_v49 = vpack.c.bf16 %v632_v6, %v630_v55  ;;  %v635_v53 = vadd.f32 %v3152_v22, %v592_v59  ;;  %v636_v56 = vadd.f32 %v3156_v40, %v593_v18 }
 0x1b8   : > { %v591_v45 = vmul.f32 %v3146_v34, %v548_v13  ;;  %v2483_v34 = vld [vmem:[#allocation5 + $0x2e0] ss:$24 sps:$4 sm:$0xff]  }
 0x1b9   : > { %1335 = vmatmul.mubr.bf16.gmra.mrb[16].mxu0 %v3259_v11  ;;  %1448 = vmatmul.mubr.bf16.gmra.mrb[16].mxu1 %v3259_v11  ;;  %v653_v8 = vpack.c.bf16 %v637_v58, %v635_v53 }
 0x1ba   : > { %1505 = vmatpush1.bf16.msra.mxu0 %v2462_v29  ;;  %2269 = vmatpush1.bf16.msra.mxu1 %v2462_v29  ;;  %v634_v22 = vadd.f32 %v3156_v40, %v591_v45  ;;  %v2485_v29 = vld [vmem:[#allocation5 + $0x2e4] ss:$24 sps:$4 sm:$0xff]   ;;  %v762_v40 = vsub.s32 2, %v3128_v12 }
 0x1bb   : > { %1344 = vmatprep.mubr.bf16.mxu0 %v3265_v46  ;;  %1457 = vmatprep.mubr.bf16.mxu1 %v3265_v46 }
 0x1bc   : > { %1506 = vmatprep.subr.bf16.mxu0 %v2467_v2  ;;  %2254 = vmatprep.subr.bf16.mxu1 %v2467_v2  ;;  %v652_v63 = vpack.c.bf16 %v636_v56, %v634_v22 }
 0x1be   : > { %1507 = vmatpush1.bf16.msra.mxu0 %v2465_v31  ;;  %2270 = vmatpush1.bf16.msra.mxu1 %v2465_v31 }
 0x1bf   : > { %1508 = vmatprep.subr.bf16.mxu0 %v2470_v61  ;;  %2255 = vmatprep.subr.bf16.mxu1 %v2470_v61 }
 0x1c1   : > { %1345 = vmatmul.mubr.bf16.gmra.mrb[20].mxu0 %v3279_v26  ;;  %1458 = vmatmul.mubr.bf16.gmra.mrb[20].mxu1 %v3279_v26 }
 0x1c2   : > { %1509 = vmatpush1.bf16.msra.mxu0 %v2468_v9  ;;  %2271 = vmatpush1.bf16.msra.mxu1 %v2468_v9 }
 0x1c3   : > { %1354 = vmatprep.mubr.bf16.mxu0 %v3285_v3  ;;  %1467 = vmatprep.mubr.bf16.mxu1 %v3285_v3 }
 0x1c4   : > { %1510 = vmatprep.subr.bf16.mxu0 %v2473_v17  ;;  %2256 = vmatprep.subr.bf16.mxu1 %v2473_v17 }
 0x1c6   : > { %1511 = vmatpush1.bf16.msra.mxu0 %v2471_v16  ;;  %2272 = vmatpush1.bf16.msra.mxu1 %v2471_v16 }
 0x1c7   : > { %1512 = vmatprep.subr.bf16.mxu0 %v2476_v41  ;;  %2257 = vmatprep.subr.bf16.mxu1 %v2476_v41 }
 0x1c9   : > { %1355 = vmatmul.mubr.bf16.gmra.mrb[24].mxu0 %v650_v49  ;;  %1468 = vmatmul.mubr.bf16.gmra.mrb[24].mxu1 %v650_v49 }
 0x1ca   : > { %1513 = vmatpush1.bf16.msra.mxu0 %v2474_v44  ;;  %2273 = vmatpush1.bf16.msra.mxu1 %v2474_v44 }
 0x1cb   : > { %1364 = vmatprep.mubr.bf16.mxu0 %v653_v8  ;;  %1477 = vmatprep.mubr.bf16.mxu1 %v653_v8 }
 0x1cc   : > { %1514 = vmatprep.subr.bf16.mxu0 %v2479_v15  ;;  %2258 = vmatprep.subr.bf16.mxu1 %v2479_v15 }
 0x1ce   : > { %1515 = vmatpush1.bf16.msra.mxu0 %v2477_v48  ;;  %2274 = vmatpush1.bf16.msra.mxu1 %v2477_v48 }
 0x1cf   : > { %1516 = vmatprep.subr.bf16.mxu0 %v2482_v23  ;;  %2259 = vmatprep.subr.bf16.mxu1 %v2482_v23 }
 0x1d1   : > { %1365 = vmatmul.mubr.bf16.gmra.mrb[28].mxu0 %v652_v63  ;;  %1478 = vmatmul.mubr.bf16.gmra.mrb[28].mxu1 %v652_v63 }
 0x1d2   : > { %1517 = vmatpush1.bf16.msra.mxu0 %v2480_v32  ;;  %2275 = vmatpush1.bf16.msra.mxu1 %v2480_v32 }
 0x1d3   : > { %1520 = vmatprep.mubr.bf16.mxu0 %v3171_v39  ;;  %1560 = vmatprep.mubr.bf16.mxu1 %v3245_v1  ;;  %v3319_v39 = vld [vmem:[%s3546_s4] sm:$0x3f] }
 0x1d4   : > { %1518 = vmatprep.subr.bf16.mxu0 %v2485_v29  ;;  %2260 = vmatprep.subr.bf16.mxu1 %v2485_v29 }
 0x1d6   : > { %1519 = vmatpush1.bf16.msra.mxu0 %v2483_v34  ;;  %2276 = vmatpush1.bf16.msra.mxu1 %v2483_v34 }
 0x1d9   : > { %1521 = vmatmul.mubr.bf16.vlgmr.msra.gmra.mrb[32].mxu0 %v3173_v37  ;;  %1561 = vmatmul.mubr.bf16.vlgmr.msra.gmra.mrb[32].mxu1 %v3259_v11  ;;  %v766_v37 = vsub.s32 3, %v3128_v12 }
 0x1da   : > { %1530 = vmatprep.mubr.bf16.mxu0 %v3186_v43  ;;  %1570 = vmatprep.mubr.bf16.mxu1 %v3265_v46  ;;  %v3324_v43 = vrot.slane %v3319_v39, %v3134_v28 }
 0x1e1   : > { %1531 = vmatmul.mubr.bf16.gmra.mrb[36].mxu0 %v3197_v33  ;;  %1571 = vmatmul.mubr.bf16.gmra.mrb[36].mxu1 %v3279_v26  ;;  %v3327_v33 = vrot.slane %v3319_v39, %v762_v40 }
 0x1e2   : > { %1540 = vmatprep.mubr.bf16.mxu0 %v3205_v25  ;;  %1580 = vmatprep.mubr.bf16.mxu1 %v3285_v3  ;;  %v3331_v25 = vrot.slane %v3319_v39, %v3131_v14 }
 0x1e9   : > { %1541 = vmatmul.mubr.bf16.gmra.mrb[40].mxu0 %v3219_v57  ;;  %1581 = vmatmul.mubr.bf16.gmra.mrb[40].mxu1 %v650_v49  ;;  %v3334_v57 = vrot.slane %v3319_v39, %v766_v37 }
 0x1ea   : > { %1550 = vmatprep.mubr.bf16.mxu0 %v3225_v54  ;;  %1590 = vmatprep.mubr.bf16.mxu1 %v653_v8 }
 0x1f1   : > { %1551 = vmatmul.mubr.bf16.gmra.mrb[44].mxu0 %v3239_v27  ;;  %1591 = vmatmul.mubr.bf16.gmra.mrb[44].mxu1 %v652_v63 }
 0x26c   : > { %v1296_v54 = vpop.f32.mrb[0].mxu0  ;;  %v1409_v27 = vpop.f32.mrb[0].mxu1 }
 0x26d   : > { %v1297_v1 = vadd.f32 %v1296_v54, %v3324_v43  ;;  %v1410_v4 = vadd.f32 %v1409_v27, %v3327_v33  ;;  %v1298_v11 = vpop.f32.mrb[1].mxu0  ;;  %v1411_v28 = vpop.f32.mrb[1].mxu1 }
 0x26e   : > { %v1299_v51 = vadd.f32 %v1298_v11, %v3331_v25  ;;  %v1412_v10 = vadd.f32 %v1411_v28, %v3334_v57  ;;  %v1300_v2 = vpop.f32.mrb[2].mxu0  ;;  %v1413_v46 = vpop.f32.mrb[2].mxu1 }
 0x26f   : > { %v1301_v14 = vadd.f32 %v1300_v2, %v3324_v43  ;;  %v1414_v20 = vadd.f32 %v1413_v46, %v3327_v33  ;;  %v1302_v30 = vpop.f32.mrb[3].mxu0  ;;  %v1415_v7 = vpop.f32.mrb[3].mxu1 }
 0x270   : > { %v2197_v31 = vpack.c.bf16 %v1299_v51, %v1297_v1  ;;  %v2198_v19 = vpack.c.bf16 %v1412_v10, %v1410_v4  ;;  %v1303_v61 = vadd.f32 %v1302_v30, %v3331_v25  ;;  %v1416_v21 = vadd.f32 %v1415_v7, %v3334_v57 }
 0x272   : > { %1889 = vst [vmem:[%s3345_s29] sm:$0xff] %v2197_v31  ;;  %1890 = vst [vmem:[%s3345_s29 + $0x8] sm:$0xff] %v2198_v19  ;;  %v2200_v35 = vpack.c.bf16 %v1303_v61, %v1301_v14  ;;  %v2201_v36 = vpack.c.bf16 %v1416_v21, %v1414_v20 }
 0x274   : > { %1892 = vst [vmem:[%s3345_s29 + $0x18] sm:$0xff] %v2200_v35  ;;  %1893 = vst [vmem:[%s3345_s29 + $0x20] sm:$0xff] %v2201_v36  ;;  %v1306_v47 = vpop.f32.mrb[4].mxu0  ;;  %v1419_v38 = vpop.f32.mrb[4].mxu1 }
 0x275   : > { %v1307_v5 = vadd.f32 %v1306_v47, %v3324_v43  ;;  %v1420_v60 = vadd.f32 %v1419_v38, %v3327_v33  ;;  %v1308_v9 = vpop.f32.mrb[5].mxu0  ;;  %v1421_v62 = vpop.f32.mrb[5].mxu1 }
 0x276   : > { %v1309_v26 = vadd.f32 %v1308_v9, %v3331_v25  ;;  %v1422_v0 = vadd.f32 %v1421_v62, %v3334_v57  ;;  %v1310_v24 = vpop.f32.mrb[6].mxu0  ;;  %v1423_v17 = vpop.f32.mrb[6].mxu1 }
 0x277   : > { %v1311_v3 = vadd.f32 %v1310_v24, %v3324_v43  ;;  %v1424_v50 = vadd.f32 %v1423_v17, %v3327_v33  ;;  %v1312_v42 = vpop.f32.mrb[7].mxu0  ;;  %v1425_v16 = vpop.f32.mrb[7].mxu1 }
 0x278   : > { %v2203_v41 = vpack.c.bf16 %v1309_v26, %v1307_v5  ;;  %v2204_v6 = vpack.c.bf16 %v1422_v0, %v1420_v60  ;;  %v1313_v59 = vadd.f32 %v1312_v42, %v3331_v25  ;;  %v1426_v52 = vadd.f32 %v1425_v16, %v3334_v57 }
 0x27a   : > { %1895 = vst [vmem:[%s3345_s29 + $0x30] sm:$0xff] %v2203_v41  ;;  %1896 = vst [vmem:[%s3345_s29 + $0x38] sm:$0xff] %v2204_v6  ;;  %v2206_v55 = vpack.c.bf16 %v1313_v59, %v1311_v3  ;;  %v2207_v58 = vpack.c.bf16 %v1426_v52, %v1424_v50 }
 0x27c   : > { %1898 = vst [vmem:[%s3345_s29 + $0x48] sm:$0xff] %v2206_v55  ;;  %1899 = vst [vmem:[%s3345_s29 + $0x50] sm:$0xff] %v2207_v58  ;;  %v1316_v13 = vpop.f32.mrb[8].mxu0  ;;  %v1429_v44 = vpop.f32.mrb[8].mxu1 }
 0x27d   : > { %v1317_v49 = vadd.f32 %v1316_v13, %v3324_v43  ;;  %v1430_v53 = vadd.f32 %v1429_v44, %v3327_v33  ;;  %v1318_v18 = vpop.f32.mrb[9].mxu0  ;;  %v1431_v15 = vpop.f32.mrb[9].mxu1 }
 0x27e   : > { %v1319_v8 = vadd.f32 %v1318_v18, %v3331_v25  ;;  %v1432_v45 = vadd.f32 %v1431_v15, %v3334_v57  ;;  %v1320_v48 = vpop.f32.mrb[10].mxu0  ;;  %v1433_v23 = vpop.f32.mrb[10].mxu1 }
 0x27f   : > { %v1321_v56 = vadd.f32 %v1320_v48, %v3324_v43  ;;  %v1434_v22 = vadd.f32 %v1433_v23, %v3327_v33  ;;  %v1322_v32 = vpop.f32.mrb[11].mxu0  ;;  %v1435_v63 = vpop.f32.mrb[11].mxu1 }
 0x280   : > { %v2209_v29 = vpack.c.bf16 %v1319_v8, %v1317_v49  ;;  %v2210_v34 = vpack.c.bf16 %v1432_v45, %v1430_v53  ;;  %v1323_v40 = vadd.f32 %v1322_v32, %v3331_v25  ;;  %v1436_v37 = vadd.f32 %v1435_v63, %v3334_v57 }
 0x282   : > { %1901 = vst [vmem:[%s3345_s29 + $0x60] sm:$0xff] %v2209_v29  ;;  %1902 = vst [vmem:[%s3345_s29 + $0x68] sm:$0xff] %v2210_v34  ;;  %v2212_v54 = vpack.c.bf16 %v1323_v40, %v1321_v56  ;;  %v2213_v27 = vpack.c.bf16 %v1436_v37, %v1434_v22 }
 0x284   : > { %1904 = vst [vmem:[%s3345_s29 + $0x78] sm:$0xff] %v2212_v54  ;;  %1905 = vst [vmem:[%s3345_s29 + $0x80] sm:$0xff] %v2213_v27  ;;  %v1326_v1 = vpop.f32.mrb[12].mxu0  ;;  %v1439_v4 = vpop.f32.mrb[12].mxu1 }
 0x285   : > { %v1327_v11 = vadd.f32 %v1326_v1, %v3324_v43  ;;  %v1440_v28 = vadd.f32 %v1439_v4, %v3327_v33  ;;  %v1328_v51 = vpop.f32.mrb[13].mxu0  ;;  %v1441_v10 = vpop.f32.mrb[13].mxu1 }
 0x286   : > { %v1329_v2 = vadd.f32 %v1328_v51, %v3331_v25  ;;  %v1442_v46 = vadd.f32 %v1441_v10, %v3334_v57  ;;  %v1330_v14 = vpop.f32.mrb[14].mxu0  ;;  %v1443_v20 = vpop.f32.mrb[14].mxu1 }
 0x287   : > { %v1331_v30 = vadd.f32 %v1330_v14, %v3324_v43  ;;  %v1444_v7 = vadd.f32 %v1443_v20, %v3327_v33  ;;  %v1332_v31 = vpop.f32.mrb[15].mxu0  ;;  %v1445_v19 = vpop.f32.mrb[15].mxu1 }
 0x288   : > { %v2215_v61 = vpack.c.bf16 %v1329_v2, %v1327_v11  ;;  %v2216_v21 = vpack.c.bf16 %v1442_v46, %v1440_v28  ;;  %v1333_v35 = vadd.f32 %v1332_v31, %v3331_v25  ;;  %v1446_v36 = vadd.f32 %v1445_v19, %v3334_v57 }
 0x28a   : > { %1907 = vst [vmem:[%s3345_s29 + $0x90] sm:$0xff] %v2215_v61  ;;  %1908 = vst [vmem:[%s3345_s29 + $0x98] sm:$0xff] %v2216_v21  ;;  %v2218_v47 = vpack.c.bf16 %v1333_v35, %v1331_v30  ;;  %v2219_v38 = vpack.c.bf16 %v1446_v36, %v1444_v7 }
 0x28c   : > { %1910 = vst [vmem:[%s3345_s29 + $0xa8] sm:$0xff] %v2218_v47  ;;  %1911 = vst [vmem:[%s3345_s29 + $0xb0] sm:$0xff] %v2219_v38  ;;  %v1336_v5 = vpop.f32.mrb[16].mxu0  ;;  %v1449_v60 = vpop.f32.mrb[16].mxu1 }
 0x28d   : > { %v1337_v9 = vadd.f32 %v1336_v5, %v3324_v43  ;;  %v1450_v62 = vadd.f32 %v1449_v60, %v3327_v33  ;;  %v1338_v26 = vpop.f32.mrb[17].mxu0  ;;  %v1451_v0 = vpop.f32.mrb[17].mxu1 }
 0x28e   : > { %v1339_v24 = vadd.f32 %v1338_v26, %v3331_v25  ;;  %v1452_v17 = vadd.f32 %v1451_v0, %v3334_v57  ;;  %v1340_v3 = vpop.f32.mrb[18].mxu0  ;;  %v1453_v50 = vpop.f32.mrb[18].mxu1 }
 0x28f   : > { %v1341_v42 = vadd.f32 %v1340_v3, %v3324_v43  ;;  %v1454_v16 = vadd.f32 %v1453_v50, %v3327_v33  ;;  %v1342_v41 = vpop.f32.mrb[19].mxu0  ;;  %v1455_v6 = vpop.f32.mrb[19].mxu1  ;;  %v770_v3 = vsub.s32 4, %v3128_v12 }
 0x290   : > { %v2221_v59 = vpack.c.bf16 %v1339_v24, %v1337_v9  ;;  %v2222_v52 = vpack.c.bf16 %v1452_v17, %v1450_v62  ;;  %v1343_v55 = vadd.f32 %v1342_v41, %v3331_v25  ;;  %v1456_v58 = vadd.f32 %v1455_v6, %v3334_v57 }
 0x291   : > { %v774_v6 = vsub.s32 5, %v3128_v12 }
 0x292   : > { %1913 = vst [vmem:[%s3345_s29 + $0xc0] sm:$0xff] %v2221_v59  ;;  %1914 = vst [vmem:[%s3345_s29 + $0xc8] sm:$0xff] %v2222_v52  ;;  %v2224_v13 = vpack.c.bf16 %v1343_v55, %v1341_v42  ;;  %v2225_v44 = vpack.c.bf16 %v1456_v58, %v1454_v16 }
 0x294   : > { %1916 = vst [vmem:[%s3345_s29 + $0xd8] sm:$0xff] %v2224_v13  ;;  %1917 = vst [vmem:[%s3345_s29 + $0xe0] sm:$0xff] %v2225_v44  ;;  %v1346_v49 = vpop.f32.mrb[20].mxu0  ;;  %v1459_v53 = vpop.f32.mrb[20].mxu1 }
 0x295   : > { %v1347_v18 = vadd.f32 %v1346_v49, %v3324_v43  ;;  %v1460_v15 = vadd.f32 %v1459_v53, %v3327_v33  ;;  %v1348_v8 = vpop.f32.mrb[21].mxu0  ;;  %v1461_v45 = vpop.f32.mrb[21].mxu1 }
 0x296   : > { %v1349_v48 = vadd.f32 %v1348_v8, %v3331_v25  ;;  %v1462_v23 = vadd.f32 %v1461_v45, %v3334_v57  ;;  %v1350_v56 = vpop.f32.mrb[22].mxu0  ;;  %v1463_v22 = vpop.f32.mrb[22].mxu1  ;;  %v3439_v8 = vrot.slane %v3319_v39, %v774_v6 }
 0x297   : > { %v1351_v32 = vadd.f32 %v1350_v56, %v3324_v43  ;;  %v1464_v63 = vadd.f32 %v1463_v22, %v3327_v33  ;;  %v1352_v29 = vpop.f32.mrb[23].mxu0  ;;  %v1465_v34 = vpop.f32.mrb[23].mxu1 }
 0x298   : > { %v2227_v40 = vpack.c.bf16 %v1349_v48, %v1347_v18  ;;  %v2228_v37 = vpack.c.bf16 %v1462_v23, %v1460_v15  ;;  %v1353_v54 = vadd.f32 %v1352_v29, %v3331_v25  ;;  %v1466_v27 = vadd.f32 %v1465_v34, %v3334_v57 }
 0x299   : > { %v3434_v18 = vrot.slane %v3319_v39, %v770_v3 }
 0x29a   : > { %1919 = vst [vmem:[%s3345_s29 + $0xf0] sm:$0xff] %v2227_v40  ;;  %1920 = vst [vmem:[%s3345_s29 + $0xf8] sm:$0xff] %v2228_v37  ;;  %v2230_v1 = vpack.c.bf16 %v1353_v54, %v1351_v32  ;;  %v2231_v4 = vpack.c.bf16 %v1466_v27, %v1464_v63 }
 0x29c   : > { %1922 = vst [vmem:[%s3345_s29 + $0x108] sm:$0xff] %v2230_v1  ;;  %1923 = vst [vmem:[%s3345_s29 + $0x110] sm:$0xff] %v2231_v4  ;;  %v1356_v11 = vpop.f32.mrb[24].mxu0  ;;  %v1469_v28 = vpop.f32.mrb[24].mxu1 }
 0x29d   : > { %v1357_v51 = vadd.f32 %v1356_v11, %v3324_v43  ;;  %v1470_v10 = vadd.f32 %v1469_v28, %v3327_v33  ;;  %v1358_v2 = vpop.f32.mrb[25].mxu0  ;;  %v1471_v46 = vpop.f32.mrb[25].mxu1 }
 0x29e   : > { %v1359_v14 = vadd.f32 %v1358_v2, %v3331_v25  ;;  %v1472_v20 = vadd.f32 %v1471_v46, %v3334_v57  ;;  %v1360_v30 = vpop.f32.mrb[26].mxu0  ;;  %v1473_v7 = vpop.f32.mrb[26].mxu1 }
 0x29f   : > { %v1361_v31 = vadd.f32 %v1360_v30, %v3324_v43  ;;  %v1474_v19 = vadd.f32 %v1473_v7, %v3327_v33  ;;  %v1362_v61 = vpop.f32.mrb[27].mxu0  ;;  %v1475_v21 = vpop.f32.mrb[27].mxu1 }
 0x2a0   : > { %v2233_v35 = vpack.c.bf16 %v1359_v14, %v1357_v51  ;;  %v2234_v36 = vpack.c.bf16 %v1472_v20, %v1470_v10  ;;  %v1363_v47 = vadd.f32 %v1362_v61, %v3331_v25  ;;  %v1476_v38 = vadd.f32 %v1475_v21, %v3334_v57 }
 0x2a2   : > { %1925 = vst [vmem:[%s3345_s29 + $0x120] sm:$0xff] %v2233_v35  ;;  %1926 = vst [vmem:[%s3345_s29 + $0x128] sm:$0xff] %v2234_v36  ;;  %v2236_v5 = vpack.c.bf16 %v1363_v47, %v1361_v31  ;;  %v2237_v60 = vpack.c.bf16 %v1476_v38, %v1474_v19 }
 0x2a4   : > { %1928 = vst [vmem:[%s3345_s29 + $0x138] sm:$0xff] %v2236_v5  ;;  %1929 = vst [vmem:[%s3345_s29 + $0x140] sm:$0xff] %v2237_v60  ;;  %v1366_v9 = vpop.f32.mrb[28].mxu0  ;;  %v1479_v62 = vpop.f32.mrb[28].mxu1 }
 0x2a5   : > { %v1367_v26 = vadd.f32 %v1366_v9, %v3324_v43  ;;  %v1480_v0 = vadd.f32 %v1479_v62, %v3327_v33  ;;  %v1368_v24 = vpop.f32.mrb[29].mxu0  ;;  %v1481_v17 = vpop.f32.mrb[29].mxu1 }
 0x2a6   : > { %v1369_v50 = vadd.f32 %v1368_v24, %v3331_v25  ;;  %v1482_v42 = vadd.f32 %v1481_v17, %v3334_v57  ;;  %v1370_v16 = vpop.f32.mrb[30].mxu0  ;;  %v1483_v41 = vpop.f32.mrb[30].mxu1 }
 0x2a7   : > { %v1371_v59 = vadd.f32 %v1370_v16, %v3324_v43  ;;  %v1484_v52 = vadd.f32 %v1483_v41, %v3327_v33  ;;  %v1372_v55 = vpop.f32.mrb[31].mxu0  ;;  %v1485_v58 = vpop.f32.mrb[31].mxu1 }
 0x2a8   : > { %v2239_v13 = vpack.c.bf16 %v1369_v50, %v1367_v26  ;;  %v2240_v44 = vpack.c.bf16 %v1482_v42, %v1480_v0  ;;  %v1373_v49 = vadd.f32 %v1372_v55, %v3331_v25  ;;  %v1486_v53 = vadd.f32 %v1485_v58, %v3334_v57 }
 0x2aa   : > { %1931 = vst [vmem:[%s3345_s29 + $0x150] sm:$0xff] %v2239_v13  ;;  %1932 = vst [vmem:[%s3345_s29 + $0x158] sm:$0xff] %v2240_v44  ;;  %v2242_v15 = vpack.c.bf16 %v1373_v49, %v1371_v59  ;;  %v2243_v12 = vpack.c.bf16 %v1486_v53, %v1484_v52 }
 0x2ac   : > { %1934 = vst [vmem:[%s3345_s29 + $0x168] sm:$0xff] %v2242_v15  ;;  %1935 = vst [vmem:[%s3345_s29 + $0x170] sm:$0xff] %v2243_v12  ;;  %v1522_v43 = vpop.f32.mrb[32].mxu0  ;;  %v1562_v33 = vpop.f32.mrb[32].mxu1 }
 0x2ad   : > { %v1523_v45 = vadd.f32 %v1522_v43, %v3434_v18  ;;  %v1563_v25 = vadd.f32 %v1562_v33, %v3434_v18  ;;  %v1524_v57 = vpop.f32.mrb[33].mxu0  ;;  %v1564_v48 = vpop.f32.mrb[33].mxu1 }
 0x2ae   : > { %v1525_v23 = vadd.f32 %v1524_v57, %v3439_v8  ;;  %v1565_v56 = vadd.f32 %v1564_v48, %v3439_v8  ;;  %v1526_v39 = vpop.f32.mrb[34].mxu0  ;;  %v1566_v22 = vpop.f32.mrb[34].mxu1 }
 0x2af   : > { %v1527_v32 = vadd.f32 %v1526_v39, %v3434_v18  ;;  %v1567_v63 = vadd.f32 %v1566_v22, %v3434_v18  ;;  %v1528_v29 = vpop.f32.mrb[35].mxu0  ;;  %v1568_v34 = vpop.f32.mrb[35].mxu1 }
 0x2b0   : > { %v2199_v40 = vpack.c.bf16 %v1525_v23, %v1523_v45  ;;  %v2223_v37 = vpack.c.bf16 %v1565_v56, %v1563_v25  ;;  %v1529_v54 = vadd.f32 %v1528_v29, %v3439_v8  ;;  %v1569_v27 = vadd.f32 %v1568_v34, %v3439_v8 }
 0x2b2   : > { %1891 = vst [vmem:[%s3345_s29 + $0x10] sm:$0xff] %v2199_v40  ;;  %1915 = vst [vmem:[%s3345_s29 + $0xd0] sm:$0xff] %v2223_v37  ;;  %v2202_v1 = vpack.c.bf16 %v1529_v54, %v1527_v32  ;;  %v2226_v4 = vpack.c.bf16 %v1569_v27, %v1567_v63 }
 0x2b4   : > { %1894 = vst [vmem:[%s3345_s29 + $0x28] sm:$0xff] %v2202_v1  ;;  %1918 = vst [vmem:[%s3345_s29 + $0xe8] sm:$0xff] %v2226_v4  ;;  %v1532_v11 = vpop.f32.mrb[36].mxu0  ;;  %v1572_v28 = vpop.f32.mrb[36].mxu1 }
 0x2b5   : > { %v1533_v51 = vadd.f32 %v1532_v11, %v3434_v18  ;;  %v1573_v10 = vadd.f32 %v1572_v28, %v3434_v18  ;;  %v1534_v2 = vpop.f32.mrb[37].mxu0  ;;  %v1574_v46 = vpop.f32.mrb[37].mxu1 }
 0x2b6   : > { %v1535_v14 = vadd.f32 %v1534_v2, %v3439_v8  ;;  %v1575_v20 = vadd.f32 %v1574_v46, %v3439_v8  ;;  %v1536_v30 = vpop.f32.mrb[38].mxu0  ;;  %v1576_v7 = vpop.f32.mrb[38].mxu1 }
 0x2b7   : > { %v1537_v31 = vadd.f32 %v1536_v30, %v3434_v18  ;;  %v1577_v19 = vadd.f32 %v1576_v7, %v3434_v18  ;;  %v1538_v61 = vpop.f32.mrb[39].mxu0  ;;  %v1578_v21 = vpop.f32.mrb[39].mxu1 }
 0x2b8   : > { %v2205_v35 = vpack.c.bf16 %v1535_v14, %v1533_v51  ;;  %v2229_v36 = vpack.c.bf16 %v1575_v20, %v1573_v10  ;;  %v1539_v47 = vadd.f32 %v1538_v61, %v3439_v8  ;;  %v1579_v38 = vadd.f32 %v1578_v21, %v3439_v8 }
 0x2ba   : > { %1897 = vst [vmem:[%s3345_s29 + $0x40] sm:$0xff] %v2205_v35  ;;  %1921 = vst [vmem:[%s3345_s29 + $0x100] sm:$0xff] %v2229_v36  ;;  %v2208_v5 = vpack.c.bf16 %v1539_v47, %v1537_v31  ;;  %v2232_v60 = vpack.c.bf16 %v1579_v38, %v1577_v19 }
 0x2bc   : > { %1900 = vst [vmem:[%s3345_s29 + $0x58] sm:$0xff] %v2208_v5  ;;  %1924 = vst [vmem:[%s3345_s29 + $0x118] sm:$0xff] %v2232_v60  ;;  %v1542_v9 = vpop.f32.mrb[40].mxu0  ;;  %v1582_v62 = vpop.f32.mrb[40].mxu1 }
 0x2bd   : > { %v1543_v26 = vadd.f32 %v1542_v9, %v3434_v18  ;;  %v1583_v0 = vadd.f32 %v1582_v62, %v3434_v18  ;;  %v1544_v24 = vpop.f32.mrb[41].mxu0  ;;  %v1584_v17 = vpop.f32.mrb[41].mxu1 }
 0x2be   : > { %v1545_v3 = vadd.f32 %v1544_v24, %v3439_v8  ;;  %v1585_v50 = vadd.f32 %v1584_v17, %v3439_v8  ;;  %v1546_v42 = vpop.f32.mrb[42].mxu0  ;;  %v1586_v16 = vpop.f32.mrb[42].mxu1 }
 0x2bf   : > { %v1547_v41 = vadd.f32 %v1546_v42, %v3434_v18  ;;  %v1587_v6 = vadd.f32 %v1586_v16, %v3434_v18  ;;  %v1548_v59 = vpop.f32.mrb[43].mxu0  ;;  %v1588_v52 = vpop.f32.mrb[43].mxu1 }
 0x2c0   : > { %v2211_v55 = vpack.c.bf16 %v1545_v3, %v1543_v26  ;;  %v2235_v58 = vpack.c.bf16 %v1585_v50, %v1583_v0  ;;  %v1549_v13 = vadd.f32 %v1548_v59, %v3439_v8  ;;  %v1589_v44 = vadd.f32 %v1588_v52, %v3439_v8 }
 0x2c2   : > { %1903 = vst [vmem:[%s3345_s29 + $0x70] sm:$0xff] %v2211_v55  ;;  %1927 = vst [vmem:[%s3345_s29 + $0x130] sm:$0xff] %v2235_v58  ;;  %v2214_v49 = vpack.c.bf16 %v1549_v13, %v1547_v41  ;;  %v2238_v53 = vpack.c.bf16 %v1589_v44, %v1587_v6 }
 0x2c4   : > { %1906 = vst [vmem:[%s3345_s29 + $0x88] sm:$0xff] %v2214_v49  ;;  %1930 = vst [vmem:[%s3345_s29 + $0x148] sm:$0xff] %v2238_v53  ;;  %v1552_v15 = vpop.f32.mrb[44].mxu0  ;;  %v1592_v12 = vpop.f32.mrb[44].mxu1 }
 0x2c5   : > { %v1553_v43 = vadd.f32 %v1552_v15, %v3434_v18  ;;  %v1593_v33 = vadd.f32 %v1592_v12, %v3434_v18  ;;  %v1554_v45 = vpop.f32.mrb[45].mxu0  ;;  %v1594_v25 = vpop.f32.mrb[45].mxu1 }
 0x2c6   : > { %v1555_v57 = vadd.f32 %v1554_v45, %v3439_v8  ;;  %v1595_v48 = vadd.f32 %v1594_v25, %v3439_v8  ;;  %v1556_v23 = vpop.f32.mrb[46].mxu0  ;;  %v1596_v56 = vpop.f32.mrb[46].mxu1 }
 0x2c7   : > { %v1557_v39 = vadd.f32 %v1556_v23, %v3434_v18  ;;  %v1597_v22 = vadd.f32 %v1596_v56, %v3434_v18  ;;  %v1558_v32 = vpop.f32.mrb[47].mxu0  ;;  %v1598_v63 = vpop.f32.mrb[47].mxu1 }
 0x2c8   : > { %v2217_v29 = vpack.c.bf16 %v1555_v57, %v1553_v43  ;;  %v2241_v34 = vpack.c.bf16 %v1595_v48, %v1593_v33  ;;  %v1559_v40 = vadd.f32 %v1558_v32, %v3439_v8  ;;  %v1599_v37 = vadd.f32 %v1598_v63, %v3439_v8 }
 0x2ca   : > { %1909 = vst [vmem:[%s3345_s29 + $0xa0] sm:$0xff] %v2217_v29  ;;  %1933 = vst [vmem:[%s3345_s29 + $0x160] sm:$0xff] %v2241_v34  ;;  %v2220_v54 = vpack.c.bf16 %v1559_v40, %v1557_v39  ;;  %v2244_v18 = vpack.c.bf16 %v1599_v37, %v1597_v22 }
 0x2cc   : > { %1912 = vst [vmem:[%s3345_s29 + $0xb8] sm:$0xff] %v2220_v54  ;;  %1936 = vst [vmem:[%s3345_s29 + $0x178] sm:$0xff] %v2244_v18 }
 0x2cd   : > { %2589 = shalt.err (!%p2586_p7)
}
 0x2ce   : > { %s2590_s14 = scalar_lea.hbm %s3492_s17, 6144  ;;  %s2594_s15 = scalar_lea.hbm %s3547_s5, 12288 }
 0x2cf   : > { %p2591_p9 = scmp.ne.s32.totalorder %s3492_s17, %s2590_s14  ;;  %p2595_p5 = scmp.lt.u32.totalorder %s3492_s17, %s3547_s5 }
 0x2d0   : > { %p2596_p11 = scmp.lt.u32.totalorder %s2594_s15, %s2590_s14  ;;  %p2598_p4 = scmp.lt.u32.totalorder %s2590_s14, %s3492_s17 }
 0x2d1   : > { %p2592_p2 = pnand %p2591_p9, %p2778_p12 }
 0x2d2   : > { %p2597_p1 = por %p2596_p11, %p2595_p5 }
 0x2d3   : > { %p2593_p0 = pneg %p2592_p2 }
 0x2d4   : > { %p2599_p6 = por %p2598_p4, %p2597_p1 }
 0x2d6   : > { %p2600_p8 = pnand %p2599_p6, %p2593_p0 }
 0x2d8   : > { %2603 = shalt.err (!%p2600_p8)
}
 0x2d9   : > { %s2655_s13 = smov 384   ;;  %s2656_s22 = smov 24  }
 0x2da   : > { %2285 = dma.vmem_to_hbm [thread:$0]  (%p2778_p12), %s3496_s28, 6144, %s3492_s17, %s1938_s27, %s2655_s13, %s2655_s13, %s2656_s22  }
 0x2db PF: > { %s1967_s16 = sand.u32 1, %s2634_s18   ;;  %p3562_p10 = scmp.ne.s32.totalorder %s3552_s25, 0 }
 0x2dc   : > { %p3563_p13 = scmp.ge.s32.totalorder %s2646_s21, 2  ;;  %s1968_s11 = scalar_lea.sflag [#allocation4], %s1967_s16 }
 0x2de   : > { %p2296_p3 = pnand %p3563_p13, %p3562_p10 }
 0x2e0   : > { %2629 = dma.done.wait (!%p2296_p3), %s1968_s11, 6144  }
 0x2e1   : > { %2631 = vsyncadd (!%p2296_p3), %s1968_s11, 4294961152  ;;  %p19_p7 = scmp.ge.s32.totalorder %s2743_s30, 4   ;;  %s3564_s18 = smov %s2638_s19 }
 0x2e2   : > { %s3565_s19 = smov %s2642_s20  ;;  %s3566_s20 = smov %s2774_s8 }
 0x2e3   : > { %s3567_s21 = smov %s2743_s30  ;;  %21 = sbr.rel (!%p19_p7) target bundleno = 6 (0x6), region = 89 }
 0x2ea   :  { %1973 = vsyncpa [#allocation3], 1 }
 0x2eb   :  { %1975 = vsyncpa [#allocation3 + $0x1], 1 }
 0x2ec   :  { %1976 = vsyncpa [#allocation6], 1 }
 0x2ed   :  { %1977 = vsyncpa [#allocation4], 1 }
 0x2ee   :  { %1979 = vsyncpa [#allocation4 + $0x1], 1 }

</bundles_post_ra>
